<compile_context>
chip_gen: v5e
topology: v5e:2x2
jax: 0.10.0
libtpu: 0.0.40
codegen_flags: <defaults>
</compile_context>

<pallas_src>
import functools

import numpy as np

import jax
import jax.numpy as jnp
from jax import lax
from jax.experimental import pallas as pl

BN_EPS = 1e-5
C_PAD = 128                       # lane-dense channel padding for the output
CONV1_CFG = (3, 1, 1, 1)          # (kernel, stride, padding, dilation) conv1
ENC_CONV2_CFG = ((3, 2, 1, 4),    # encoder_1 second conv
                 (5, 2, 1, 2),    # encoder_2 second conv
                 (7, 2, 1, 1))    # encoder_3 second conv


def _conv_out_len(l_in, k, s, p, d):
    return (l_in + 2 * p - d * (k - 1) - 1) // s + 1


def _gather_mats(batch, l_in, l_out, k, s, p, d):
    """0/1 tap-selection matrices G of shape (k, batch*l_out, batch*l_in).

    (G[k] @ x_rows)[b*l_out + lo, :] == x_padded[b, lo*s + k*d - p, :]
    (an all-zero row where the tap lands in the zero padding), so a 1-D conv
    becomes  y = sum_k G[k] @ (x_rows @ W_k)  with no gathers anywhere.
    """
    g = np.zeros((k, batch * l_out, batch * l_in), np.float32)
    for kk in range(k):
        for b in range(batch):
            for lo in range(l_out):
                li = lo * s + kk * d - p
                if 0 <= li < l_in:
                    g[kk, b * l_out + lo, b * l_in + li] = 1.0
    return g


def _bn_relu(y, gamma, beta):
    """Training-mode BatchNorm1d (batch stats, biased var) + ReLU, one pass."""
    inv_r = 1.0 / y.shape[0]
    mean = jnp.sum(y, axis=0, keepdims=True) * inv_r
    var = jnp.sum(y * y, axis=0, keepdims=True) * inv_r - mean * mean
    var = jnp.maximum(var, 0.0)
    scale = gamma * lax.rsqrt(var + BN_EPS)
    shift = beta - mean * scale
    return jnp.maximum(y * scale + shift, 0.0)


def _make_generator_kernel(batch, length, hidden, enc_meta, l_total, c_pad):
    """Single fused kernel covering all 6 conv+BN+ReLU blocks."""
    k1 = CONV1_CFG[0]
    h3 = 3 * hidden

    def kernel(x_ref, g1_ref, w1_ref, gm1_ref, bt1_ref, *rest):
        o_ref = rest[-1]
        x = x_ref[...]                                     # (B*L, C_in)

        # ---- stage 1: the three identical conv1 blocks merged to 96 chans.
        y1 = jnp.zeros((batch * length, h3), jnp.float32)
        for k in range(k1):                                # static tap loop
            part = jnp.dot(x, w1_ref[k], preferred_element_type=jnp.float32)
            y1 = y1 + jnp.dot(g1_ref[k], part,
                              preferred_element_type=jnp.float32)
        y1 = _bn_relu(y1, gm1_ref[...], bt1_ref[...])

        # ---- stage 2: per-encoder dilated/strided conv2 + BN + ReLU.
        for e, (ksz, l_out, off) in enumerate(enc_meta):
            g2_ref, w2_ref, gm2_ref, bt2_ref = rest[4 * e:4 * e + 4]
            y1_e = y1[:, e * hidden:(e + 1) * hidden]      # this encoder
            acc = jnp.zeros((batch * l_out, c_pad), jnp.float32)
            for k in range(ksz):                           # static tap loop
                part = jnp.dot(y1_e, w2_ref[k],
                               preferred_element_type=jnp.float32)
                acc = acc + jnp.dot(g2_ref[k], part,
                                    preferred_element_type=jnp.float32)
            y2 = _bn_relu(acc, gm2_ref[...], bt2_ref[...])
            # Assemble torch.cat((fea_1, fea_2, fea_3), dim=2) directly in the
            # (B*L_total, C_PAD) output rows.
            for b in range(batch):
                row = b * l_total + off
                o_ref[row:row + l_out, :] = y2[b * l_out:(b + 1) * l_out, :]

    return kernel


def generator_forward(src, params, *, hidden_dim):
    """src: (B, input_dim, L) float32 -> (B, hidden_dim, L1+L2+L3)."""
    b, c_in, l = src.shape

    # Static per-shape plan (numpy only; resolved at trace time, never traced).
    k1, s1, p1, d1 = CONV1_CFG
    l1 = _conv_out_len(l, k1, s1, p1, d1)
    g1 = jnp.asarray(_gather_mats(b, l, l1, k1, s1, p1, d1))
    enc_meta, g2_list, off = [], [], 0
    for (k2, s2, p2, d2) in ENC_CONV2_CFG:
        l2 = _conv_out_len(l1, k2, s2, p2, d2)
        g2_list.append(jnp.asarray(_gather_mats(b, l1, l2, k2, s2, p2, d2)))
        enc_meta.append((k2, l2, off))
        off += l2
    l_total = off

    # Layout glue: NCL -> (rows = B*L, channels).
    x_rows = jnp.transpose(src, (0, 2, 1)).reshape(b * l, c_in)

    kernel = _make_generator_kernel(b, l1, hidden_dim, enc_meta, l_total, C_PAD)
    args = [x_rows, g1, params["w1"], params["gamma1"], params["beta1"]]
    for e in range(3):
        enc = params["enc2"][e]
        args += [g2_list[e], enc["w"], enc["gamma"], enc["beta"]]

    # No grid: everything (a few hundred KB) lives as whole-array VMEM blocks.
    out_pad = pl.pallas_call(
        kernel,
        out_shape=jax.ShapeDtypeStruct((b * l_total, C_PAD), jnp.float32),
    )(*args)

    out = out_pad[:, :hidden_dim].reshape(b, l_total, hidden_dim)
    return jnp.transpose(out, (0, 2, 1))


# ----------------------------------------------------------------------------
# Parameters (synthetic, torch-like layouts) + packing for the kernel
# ----------------------------------------------------------------------------
def init_generator_params(key, input_dim, hidden_dim):
    """Synthetic Conv1d / BatchNorm1d parameters in torch layouts.

    Conv biases are omitted: under training-mode BatchNorm a per-channel bias
    cancels exactly in (y - mean), so it is dead compute.
    """
    raw = []
    enc_keys = jax.random.split(key, 3)
    k1 = CONV1_CFG[0]
    for e in range(3):
        k2 = ENC_CONV2_CFG[e][0]
        kw1, kg1, kb1, kw2, kg2, kb2 = jax.random.split(enc_keys[e], 6)
        s1 = float(1.0 / np.sqrt(input_dim * k1))
        s2 = float(1.0 / np.sqrt(hidden_dim * k2))
        raw.append(dict(
            w1=jax.random.uniform(kw1, (hidden_dim, input_dim, k1),
                                  jnp.float32, -s1, s1),
            gamma1=1.0 + 0.1 * jax.random.normal(kg1, (hidden_dim,), jnp.float32),
            beta1=0.1 * jax.random.normal(kb1, (hidden_dim,), jnp.float32),
            w2=jax.random.uniform(kw2, (hidden_dim, hidden_dim, k2),
                                  jnp.float32, -s2, s2),
            gamma2=1.0 + 0.1 * jax.random.normal(kg2, (hidden_dim,), jnp.float32),
            beta2=0.1 * jax.random.normal(kb2, (hidden_dim,), jnp.float32),
        ))
    return raw


def pack_params(raw_params, hidden_dim, c_pad=C_PAD):
    """Torch-layout params -> fused-kernel layout (merged + tap-major + padded)."""
    h = hidden_dim
    k1 = CONV1_CFG[0]
    # Merged conv1 weights: per tap k, (C_in, 3H) with column block e = encoder e.
    w1 = jnp.stack(
        [jnp.concatenate([raw_params[e]["w1"][:, :, k].T for e in range(3)],
                         axis=1) for k in range(k1)], axis=0)
    gamma1 = jnp.concatenate([raw_params[e]["gamma1"] for e in range(3)]
                             ).reshape(1, 3 * h)
    beta1 = jnp.concatenate([raw_params[e]["beta1"] for e in range(3)]
                            ).reshape(1, 3 * h)
    enc2 = []
    for e in range(3):
        ksz = ENC_CONV2_CFG[e][0]
        w2 = jnp.stack(
            [jnp.pad(raw_params[e]["w2"][:, :, k].T, ((0, 0), (0, c_pad - h)))
             for k in range(ksz)], axis=0)                 # (K_e, H, C_PAD)
        gamma2 = jnp.pad(raw_params[e]["gamma2"], (0, c_pad - h)).reshape(1, c_pad)
        beta2 = jnp.pad(raw_params[e]["beta2"], (0, c_pad - h)).reshape(1, c_pad)
        enc2.append(dict(w=w2, gamma=gamma2, beta=beta2))
    return dict(w1=w1, gamma1=gamma1, beta1=beta1, enc2=enc2)


# ----------------------------------------------------------------------------
# Pure-JAX reference (lax.conv) of the PyTorch module, for verification.
# ----------------------------------------------------------------------------
def _conv_bn_relu_ref(x, w, gamma, beta, stride, padding, dilation):
    y = lax.conv_general_dilated(
        x, w, window_strides=(stride,), padding=[(padding, padding)],
        rhs_dilation=(dilation,), dimension_numbers=("NCH", "OIH", "NCH"),
        precision=lax.Precision.HIGHEST)
    mean = jnp.mean(y, axis=(0, 2), keepdims=True)
    var = jnp.mean((y - mean) ** 2, axis=(0, 2), keepdims=True)
    y_hat = (y - mean) * lax.rsqrt(var + BN_EPS)
    return jnp.maximum(y_hat * gamma.reshape(1, -1, 1) + beta.reshape(1, -1, 1),
                       0.0)


def generator_reference(src, raw_params):
    feats = []
    for e, enc in enumerate(raw_params):
        _, s1, p1, d1 = CONV1_CFG
        y1 = _conv_bn_relu_ref(src, enc["w1"], enc["gamma1"], enc["beta1"],
                               s1, p1, d1)
        _, s2, p2, d2 = ENC_CONV2_CFG[e]
        y2 = _conv_bn_relu_ref(y1, enc["w2"], enc["gamma2"], enc["beta2"],
                               s2, p2, d2)
        feats.append(y2)
    return jnp.concatenate(feats, axis=2)


if __name__ == "__main__":
    B, INPUT_DIM, L, HIDDEN_DIM = 2, 4, 16, 32

    key = jax.random.PRNGKey(0)
    k_x, k_p = jax.random.split(key)
    src = jax.random.normal(k_x, (B, INPUT_DIM, L), jnp.float32)

    raw_params = init_generator_params(k_p, INPUT_DIM, HIDDEN_DIM)
    params = pack_params(raw_params, HIDDEN_DIM)

    fwd = jax.jit(functools.partial(generator_forward, hidden_dim=HIDDEN_DIM))
    out = fwd(src, params)
    jax.block_until_ready(out)

    # Expected: (B, hidden_dim, L1 + L2 + L3) = (2, 32, 5 + 5 + 6)
    assert out.shape == (B, HIDDEN_DIM, 16), out.shape

    # Numerical check against the pure-JAX reference of the PyTorch module.
    ref = generator_reference(src, raw_params)
    np.testing.assert_allclose(np.asarray(out), np.asarray(ref),
                               rtol=2e-2, atol=2e-2)

    print("KERNEL_OK")
</pallas_src>

<mosaic_0001>
module attributes {stable_mosaic.version = 11 : i64} {
  func.func @kernel(%arg0: memref<32x4xf32, #tpu.memory_space<vmem>>, %arg1: memref<3x32x32xf32, #tpu.memory_space<vmem>>, %arg2: memref<3x4x96xf32, #tpu.memory_space<vmem>>, %arg3: memref<1x96xf32, #tpu.memory_space<vmem>>, %arg4: memref<1x96xf32, #tpu.memory_space<vmem>>, %arg5: memref<3x10x32xf32, #tpu.memory_space<vmem>>, %arg6: memref<3x32x128xf32, #tpu.memory_space<vmem>>, %arg7: memref<1x128xf32, #tpu.memory_space<vmem>>, %arg8: memref<1x128xf32, #tpu.memory_space<vmem>>, %arg9: memref<5x10x32xf32, #tpu.memory_space<vmem>>, %arg10: memref<5x32x128xf32, #tpu.memory_space<vmem>>, %arg11: memref<1x128xf32, #tpu.memory_space<vmem>>, %arg12: memref<1x128xf32, #tpu.memory_space<vmem>>, %arg13: memref<7x12x32xf32, #tpu.memory_space<vmem>>, %arg14: memref<7x32x128xf32, #tpu.memory_space<vmem>>, %arg15: memref<1x128xf32, #tpu.memory_space<vmem>>, %arg16: memref<1x128xf32, #tpu.memory_space<vmem>>, %arg17: memref<32x128xf32, #tpu.memory_space<vmem>>) attributes {dimension_semantics = [], scalar_prefetch = 0 : i64, scratch_operands = 0 : i64, tpu.core_type = #tpu.core_type<tc>} {
    %c0 = arith.constant 0 : index
    %c0_0 = arith.constant 0 : index
    %0 = vector.load %arg0[%c0, %c0_0] : memref<32x4xf32, #tpu.memory_space<vmem>>, vector<32x4xf32>
    %cst = arith.constant 0.000000e+00 : f32
    %1 = vector.broadcast %cst : f32 to vector<32x96xf32>
    %c0_1 = arith.constant 0 : index
    %c0_2 = arith.constant 0 : index
    %c0_3 = arith.constant 0 : index
    %2 = vector.load %arg2[%c0_1, %c0_2, %c0_3] : memref<3x4x96xf32, #tpu.memory_space<vmem>>, vector<1x4x96xf32>
    %3 = vector.shape_cast %2 : vector<1x4x96xf32> to vector<4x96xf32>
    %cst_4 = arith.constant dense<0.000000e+00> : vector<32x96xf32>
    %4 = tpu.matmul %0, %3, %cst_4 {dimension_numbers = #tpu.dot_dimension_numbers<[1], [0], [0], [1], [0, 0, 1, 1], [], []>} : vector<32x4xf32>, vector<4x96xf32>, vector<32x96xf32> -> vector<32x96xf32>
    %c0_5 = arith.constant 0 : index
    %c0_6 = arith.constant 0 : index
    %c0_7 = arith.constant 0 : index
    %5 = vector.load %arg1[%c0_5, %c0_6, %c0_7] : memref<3x32x32xf32, #tpu.memory_space<vmem>>, vector<1x32x32xf32>
    %6 = vector.shape_cast %5 : vector<1x32x32xf32> to vector<32x32xf32>
    %cst_8 = arith.constant dense<0.000000e+00> : vector<32x96xf32>
    %7 = tpu.matmul %6, %4, %cst_8 {dimension_numbers = #tpu.dot_dimension_numbers<[1], [0], [0], [1], [0, 0, 1, 1], [], []>} : vector<32x32xf32>, vector<32x96xf32>, vector<32x96xf32> -> vector<32x96xf32>
    %8 = arith.addf %1, %7 : vector<32x96xf32>
    %c1 = arith.constant 1 : index
    %c0_9 = arith.constant 0 : index
    %c0_10 = arith.constant 0 : index
    %9 = vector.load %arg2[%c1, %c0_9, %c0_10] : memref<3x4x96xf32, #tpu.memory_space<vmem>>, vector<1x4x96xf32>
    %10 = vector.shape_cast %9 : vector<1x4x96xf32> to vector<4x96xf32>
    %cst_11 = arith.constant dense<0.000000e+00> : vector<32x96xf32>
    %11 = tpu.matmul %0, %10, %cst_11 {dimension_numbers = #tpu.dot_dimension_numbers<[1], [0], [0], [1], [0, 0, 1, 1], [], []>} : vector<32x4xf32>, vector<4x96xf32>, vector<32x96xf32> -> vector<32x96xf32>
    %c1_12 = arith.constant 1 : index
    %c0_13 = arith.constant 0 : index
    %c0_14 = arith.constant 0 : index
    %12 = vector.load %arg1[%c1_12, %c0_13, %c0_14] : memref<3x32x32xf32, #tpu.memory_space<vmem>>, vector<1x32x32xf32>
    %13 = vector.shape_cast %12 : vector<1x32x32xf32> to vector<32x32xf32>
    %cst_15 = arith.constant dense<0.000000e+00> : vector<32x96xf32>
    %14 = tpu.matmul %13, %11, %cst_15 {dimension_numbers = #tpu.dot_dimension_numbers<[1], [0], [0], [1], [0, 0, 1, 1], [], []>} : vector<32x32xf32>, vector<32x96xf32>, vector<32x96xf32> -> vector<32x96xf32>
    %15 = arith.addf %8, %14 : vector<32x96xf32>
    %c2 = arith.constant 2 : index
    %c0_16 = arith.constant 0 : index
    %c0_17 = arith.constant 0 : index
    %16 = vector.load %arg2[%c2, %c0_16, %c0_17] : memref<3x4x96xf32, #tpu.memory_space<vmem>>, vector<1x4x96xf32>
    %17 = vector.shape_cast %16 : vector<1x4x96xf32> to vector<4x96xf32>
    %cst_18 = arith.constant dense<0.000000e+00> : vector<32x96xf32>
    %18 = tpu.matmul %0, %17, %cst_18 {dimension_numbers = #tpu.dot_dimension_numbers<[1], [0], [0], [1], [0, 0, 1, 1], [], []>} : vector<32x4xf32>, vector<4x96xf32>, vector<32x96xf32> -> vector<32x96xf32>
    %c2_19 = arith.constant 2 : index
    %c0_20 = arith.constant 0 : index
    %c0_21 = arith.constant 0 : index
    %19 = vector.load %arg1[%c2_19, %c0_20, %c0_21] : memref<3x32x32xf32, #tpu.memory_space<vmem>>, vector<1x32x32xf32>
    %20 = vector.shape_cast %19 : vector<1x32x32xf32> to vector<32x32xf32>
    %cst_22 = arith.constant dense<0.000000e+00> : vector<32x96xf32>
    %21 = tpu.matmul %20, %18, %cst_22 {dimension_numbers = #tpu.dot_dimension_numbers<[1], [0], [0], [1], [0, 0, 1, 1], [], []>} : vector<32x32xf32>, vector<32x96xf32>, vector<32x96xf32> -> vector<32x96xf32>
    %22 = arith.addf %15, %21 : vector<32x96xf32>
    %c0_23 = arith.constant 0 : index
    %c0_24 = arith.constant 0 : index
    %23 = vector.load %arg3[%c0_23, %c0_24] : memref<1x96xf32, #tpu.memory_space<vmem>>, vector<1x96xf32>
    %c0_25 = arith.constant 0 : index
    %c0_26 = arith.constant 0 : index
    %24 = vector.load %arg4[%c0_25, %c0_26] : memref<1x96xf32, #tpu.memory_space<vmem>>, vector<1x96xf32>
    %cst_27 = arith.constant dense<0.000000e+00> : vector<96xf32>
    %25 = vector.multi_reduction <add>, %22, %cst_27 [0] : vector<32x96xf32> to vector<96xf32>
    %26 = vector.shape_cast %25 : vector<96xf32> to vector<1x96xf32>
    %cst_28 = arith.constant 3.125000e-02 : f32
    %27 = vector.broadcast %cst_28 : f32 to vector<1x96xf32>
    %28 = arith.mulf %26, %27 : vector<1x96xf32>
    %29 = arith.mulf %22, %22 : vector<32x96xf32>
    %cst_29 = arith.constant dense<0.000000e+00> : vector<96xf32>
    %30 = vector.multi_reduction <add>, %29, %cst_29 [0] : vector<32x96xf32> to vector<96xf32>
    %31 = vector.shape_cast %30 : vector<96xf32> to vector<1x96xf32>
    %cst_30 = arith.constant 3.125000e-02 : f32
    %32 = vector.broadcast %cst_30 : f32 to vector<1x96xf32>
    %33 = arith.mulf %31, %32 : vector<1x96xf32>
    %34 = arith.mulf %28, %28 : vector<1x96xf32>
    %35 = arith.subf %33, %34 : vector<1x96xf32>
    %cst_31 = arith.constant 0.000000e+00 : f32
    %36 = vector.broadcast %cst_31 : f32 to vector<1x96xf32>
    %37 = arith.maximumf %35, %36 : vector<1x96xf32>
    %cst_32 = arith.constant 9.99999974E-6 : f32
    %38 = vector.broadcast %cst_32 : f32 to vector<1x96xf32>
    %39 = arith.addf %37, %38 : vector<1x96xf32>
    %40 = math.rsqrt %39 : vector<1x96xf32>
    %41 = arith.mulf %23, %40 : vector<1x96xf32>
    %42 = arith.mulf %28, %41 : vector<1x96xf32>
    %43 = arith.subf %24, %42 : vector<1x96xf32>
    %44 = vector.broadcast %41 : vector<1x96xf32> to vector<32x96xf32>
    %45 = arith.mulf %22, %44 : vector<32x96xf32>
    %46 = vector.broadcast %43 : vector<1x96xf32> to vector<32x96xf32>
    %47 = arith.addf %45, %46 : vector<32x96xf32>
    %cst_33 = arith.constant 0.000000e+00 : f32
    %48 = vector.broadcast %cst_33 : f32 to vector<32x96xf32>
    %49 = arith.maximumf %47, %48 : vector<32x96xf32>
    %50 = vector.extract_strided_slice %49 {offsets = [0, 0], sizes = [32, 32], strides = [1, 1]} : vector<32x96xf32> to vector<32x32xf32>
    %cst_34 = arith.constant 0.000000e+00 : f32
    %51 = vector.broadcast %cst_34 : f32 to vector<10x128xf32>
    %c0_35 = arith.constant 0 : index
    %c0_36 = arith.constant 0 : index
    %c0_37 = arith.constant 0 : index
    %52 = vector.load %arg6[%c0_35, %c0_36, %c0_37] : memref<3x32x128xf32, #tpu.memory_space<vmem>>, vector<1x32x128xf32>
    %53 = vector.shape_cast %52 : vector<1x32x128xf32> to vector<32x128xf32>
    %cst_38 = arith.constant dense<0.000000e+00> : vector<32x128xf32>
    %54 = tpu.matmul %50, %53, %cst_38 {dimension_numbers = #tpu.dot_dimension_numbers<[1], [0], [0], [1], [0, 0, 1, 1], [], []>} : vector<32x32xf32>, vector<32x128xf32>, vector<32x128xf32> -> vector<32x128xf32>
    %c0_39 = arith.constant 0 : index
    %c0_40 = arith.constant 0 : index
    %c0_41 = arith.constant 0 : index
    %55 = vector.load %arg5[%c0_39, %c0_40, %c0_41] : memref<3x10x32xf32, #tpu.memory_space<vmem>>, vector<1x10x32xf32>
    %56 = vector.shape_cast %55 : vector<1x10x32xf32> to vector<10x32xf32>
    %cst_42 = arith.constant dense<0.000000e+00> : vector<10x128xf32>
    %57 = tpu.matmul %56, %54, %cst_42 {dimension_numbers = #tpu.dot_dimension_numbers<[1], [0], [0], [1], [0, 0, 1, 1], [], []>} : vector<10x32xf32>, vector<32x128xf32>, vector<10x128xf32> -> vector<10x128xf32>
    %58 = arith.addf %51, %57 : vector<10x128xf32>
    %c1_43 = arith.constant 1 : index
    %c0_44 = arith.constant 0 : index
    %c0_45 = arith.constant 0 : index
    %59 = vector.load %arg6[%c1_43, %c0_44, %c0_45] : memref<3x32x128xf32, #tpu.memory_space<vmem>>, vector<1x32x128xf32>
    %60 = vector.shape_cast %59 : vector<1x32x128xf32> to vector<32x128xf32>
    %cst_46 = arith.constant dense<0.000000e+00> : vector<32x128xf32>
    %61 = tpu.matmul %50, %60, %cst_46 {dimension_numbers = #tpu.dot_dimension_numbers<[1], [0], [0], [1], [0, 0, 1, 1], [], []>} : vector<32x32xf32>, vector<32x128xf32>, vector<32x128xf32> -> vector<32x128xf32>
    %c1_47 = arith.constant 1 : index
    %c0_48 = arith.constant 0 : index
    %c0_49 = arith.constant 0 : index
    %62 = vector.load %arg5[%c1_47, %c0_48, %c0_49] : memref<3x10x32xf32, #tpu.memory_space<vmem>>, vector<1x10x32xf32>
    %63 = vector.shape_cast %62 : vector<1x10x32xf32> to vector<10x32xf32>
    %cst_50 = arith.constant dense<0.000000e+00> : vector<10x128xf32>
    %64 = tpu.matmul %63, %61, %cst_50 {dimension_numbers = #tpu.dot_dimension_numbers<[1], [0], [0], [1], [0, 0, 1, 1], [], []>} : vector<10x32xf32>, vector<32x128xf32>, vector<10x128xf32> -> vector<10x128xf32>
    %65 = arith.addf %58, %64 : vector<10x128xf32>
    %c2_51 = arith.constant 2 : index
    %c0_52 = arith.constant 0 : index
    %c0_53 = arith.constant 0 : index
    %66 = vector.load %arg6[%c2_51, %c0_52, %c0_53] : memref<3x32x128xf32, #tpu.memory_space<vmem>>, vector<1x32x128xf32>
    %67 = vector.shape_cast %66 : vector<1x32x128xf32> to vector<32x128xf32>
    %cst_54 = arith.constant dense<0.000000e+00> : vector<32x128xf32>
    %68 = tpu.matmul %50, %67, %cst_54 {dimension_numbers = #tpu.dot_dimension_numbers<[1], [0], [0], [1], [0, 0, 1, 1], [], []>} : vector<32x32xf32>, vector<32x128xf32>, vector<32x128xf32> -> vector<32x128xf32>
    %c2_55 = arith.constant 2 : index
    %c0_56 = arith.constant 0 : index
    %c0_57 = arith.constant 0 : index
    %69 = vector.load %arg5[%c2_55, %c0_56, %c0_57] : memref<3x10x32xf32, #tpu.memory_space<vmem>>, vector<1x10x32xf32>
    %70 = vector.shape_cast %69 : vector<1x10x32xf32> to vector<10x32xf32>
    %cst_58 = arith.constant dense<0.000000e+00> : vector<10x128xf32>
    %71 = tpu.matmul %70, %68, %cst_58 {dimension_numbers = #tpu.dot_dimension_numbers<[1], [0], [0], [1], [0, 0, 1, 1], [], []>} : vector<10x32xf32>, vector<32x128xf32>, vector<10x128xf32> -> vector<10x128xf32>
    %72 = arith.addf %65, %71 : vector<10x128xf32>
    %c0_59 = arith.constant 0 : index
    %c0_60 = arith.constant 0 : index
    %73 = vector.load %arg7[%c0_59, %c0_60] : memref<1x128xf32, #tpu.memory_space<vmem>>, vector<1x128xf32>
    %c0_61 = arith.constant 0 : index
    %c0_62 = arith.constant 0 : index
    %74 = vector.load %arg8[%c0_61, %c0_62] : memref<1x128xf32, #tpu.memory_space<vmem>>, vector<1x128xf32>
    %cst_63 = arith.constant dense<0.000000e+00> : vector<128xf32>
    %75 = vector.multi_reduction <add>, %72, %cst_63 [0] : vector<10x128xf32> to vector<128xf32>
    %76 = vector.shape_cast %75 : vector<128xf32> to vector<1x128xf32>
    %cst_64 = arith.constant 1.000000e-01 : f32
    %77 = vector.broadcast %cst_64 : f32 to vector<1x128xf32>
    %78 = arith.mulf %76, %77 : vector<1x128xf32>
    %79 = arith.mulf %72, %72 : vector<10x128xf32>
    %cst_65 = arith.constant dense<0.000000e+00> : vector<128xf32>
    %80 = vector.multi_reduction <add>, %79, %cst_65 [0] : vector<10x128xf32> to vector<128xf32>
    %81 = vector.shape_cast %80 : vector<128xf32> to vector<1x128xf32>
    %cst_66 = arith.constant 1.000000e-01 : f32
    %82 = vector.broadcast %cst_66 : f32 to vector<1x128xf32>
    %83 = arith.mulf %81, %82 : vector<1x128xf32>
    %84 = arith.mulf %78, %78 : vector<1x128xf32>
    %85 = arith.subf %83, %84 : vector<1x128xf32>
    %cst_67 = arith.constant 0.000000e+00 : f32
    %86 = vector.broadcast %cst_67 : f32 to vector<1x128xf32>
    %87 = arith.maximumf %85, %86 : vector<1x128xf32>
    %cst_68 = arith.constant 9.99999974E-6 : f32
    %88 = vector.broadcast %cst_68 : f32 to vector<1x128xf32>
    %89 = arith.addf %87, %88 : vector<1x128xf32>
    %90 = math.rsqrt %89 : vector<1x128xf32>
    %91 = arith.mulf %73, %90 : vector<1x128xf32>
    %92 = arith.mulf %78, %91 : vector<1x128xf32>
    %93 = arith.subf %74, %92 : vector<1x128xf32>
    %94 = vector.broadcast %91 : vector<1x128xf32> to vector<10x128xf32>
    %95 = arith.mulf %72, %94 : vector<10x128xf32>
    %96 = vector.broadcast %93 : vector<1x128xf32> to vector<10x128xf32>
    %97 = arith.addf %95, %96 : vector<10x128xf32>
    %cst_69 = arith.constant 0.000000e+00 : f32
    %98 = vector.broadcast %cst_69 : f32 to vector<10x128xf32>
    %99 = arith.maximumf %97, %98 : vector<10x128xf32>
    %100 = vector.extract_strided_slice %99 {offsets = [0, 0], sizes = [5, 128], strides = [1, 1]} : vector<10x128xf32> to vector<5x128xf32>
    %c0_70 = arith.constant 0 : index
    %c0_71 = arith.constant 0 : index
    %101 = vector.load %arg17[%c0_70, %c0_71] : memref<32x128xf32, #tpu.memory_space<vmem>>, vector<5x128xf32>
    tpu.vector_store %arg17[%c0_70, %c0_71], %100 {strides = array<i32>} : memref<32x128xf32, #tpu.memory_space<vmem>>, vector<5x128xf32>,
    %102 = vector.extract_strided_slice %99 {offsets = [5, 0], sizes = [5, 128], strides = [1, 1]} : vector<10x128xf32> to vector<5x128xf32>
    %c16 = arith.constant 16 : index
    %c0_72 = arith.constant 0 : index
    %103 = vector.load %arg17[%c16, %c0_72] : memref<32x128xf32, #tpu.memory_space<vmem>>, vector<5x128xf32>
    tpu.vector_store %arg17[%c16, %c0_72], %102 {strides = array<i32>} : memref<32x128xf32, #tpu.memory_space<vmem>>, vector<5x128xf32>,
    %104 = vector.extract_strided_slice %49 {offsets = [0, 32], sizes = [32, 32], strides = [1, 1]} : vector<32x96xf32> to vector<32x32xf32>
    %cst_73 = arith.constant 0.000000e+00 : f32
    %105 = vector.broadcast %cst_73 : f32 to vector<10x128xf32>
    %c0_74 = arith.constant 0 : index
    %c0_75 = arith.constant 0 : index
    %c0_76 = arith.constant 0 : index
    %106 = vector.load %arg10[%c0_74, %c0_75, %c0_76] : memref<5x32x128xf32, #tpu.memory_space<vmem>>, vector<1x32x128xf32>
    %107 = vector.shape_cast %106 : vector<1x32x128xf32> to vector<32x128xf32>
    %cst_77 = arith.constant dense<0.000000e+00> : vector<32x128xf32>
    %108 = tpu.matmul %104, %107, %cst_77 {dimension_numbers = #tpu.dot_dimension_numbers<[1], [0], [0], [1], [0, 0, 1, 1], [], []>} : vector<32x32xf32>, vector<32x128xf32>, vector<32x128xf32> -> vector<32x128xf32>
    %c0_78 = arith.constant 0 : index
    %c0_79 = arith.constant 0 : index
    %c0_80 = arith.constant 0 : index
    %109 = vector.load %arg9[%c0_78, %c0_79, %c0_80] : memref<5x10x32xf32, #tpu.memory_space<vmem>>, vector<1x10x32xf32>
    %110 = vector.shape_cast %109 : vector<1x10x32xf32> to vector<10x32xf32>
    %cst_81 = arith.constant dense<0.000000e+00> : vector<10x128xf32>
    %111 = tpu.matmul %110, %108, %cst_81 {dimension_numbers = #tpu.dot_dimension_numbers<[1], [0], [0], [1], [0, 0, 1, 1], [], []>} : vector<10x32xf32>, vector<32x128xf32>, vector<10x128xf32> -> vector<10x128xf32>
    %112 = arith.addf %105, %111 : vector<10x128xf32>
    %c1_82 = arith.constant 1 : index
    %c0_83 = arith.constant 0 : index
    %c0_84 = arith.constant 0 : index
    %113 = vector.load %arg10[%c1_82, %c0_83, %c0_84] : memref<5x32x128xf32, #tpu.memory_space<vmem>>, vector<1x32x128xf32>
    %114 = vector.shape_cast %113 : vector<1x32x128xf32> to vector<32x128xf32>
    %cst_85 = arith.constant dense<0.000000e+00> : vector<32x128xf32>
    %115 = tpu.matmul %104, %114, %cst_85 {dimension_numbers = #tpu.dot_dimension_numbers<[1], [0], [0], [1], [0, 0, 1, 1], [], []>} : vector<32x32xf32>, vector<32x128xf32>, vector<32x128xf32> -> vector<32x128xf32>
    %c1_86 = arith.constant 1 : index
    %c0_87 = arith.constant 0 : index
    %c0_88 = arith.constant 0 : index
    %116 = vector.load %arg9[%c1_86, %c0_87, %c0_88] : memref<5x10x32xf32, #tpu.memory_space<vmem>>, vector<1x10x32xf32>
    %117 = vector.shape_cast %116 : vector<1x10x32xf32> to vector<10x32xf32>
    %cst_89 = arith.constant dense<0.000000e+00> : vector<10x128xf32>
    %118 = tpu.matmul %117, %115, %cst_89 {dimension_numbers = #tpu.dot_dimension_numbers<[1], [0], [0], [1], [0, 0, 1, 1], [], []>} : vector<10x32xf32>, vector<32x128xf32>, vector<10x128xf32> -> vector<10x128xf32>
    %119 = arith.addf %112, %118 : vector<10x128xf32>
    %c2_90 = arith.constant 2 : index
    %c0_91 = arith.constant 0 : index
    %c0_92 = arith.constant 0 : index
    %120 = vector.load %arg10[%c2_90, %c0_91, %c0_92] : memref<5x32x128xf32, #tpu.memory_space<vmem>>, vector<1x32x128xf32>
    %121 = vector.shape_cast %120 : vector<1x32x128xf32> to vector<32x128xf32>
    %cst_93 = arith.constant dense<0.000000e+00> : vector<32x128xf32>
    %122 = tpu.matmul %104, %121, %cst_93 {dimension_numbers = #tpu.dot_dimension_numbers<[1], [0], [0], [1], [0, 0, 1, 1], [], []>} : vector<32x32xf32>, vector<32x128xf32>, vector<32x128xf32> -> vector<32x128xf32>
    %c2_94 = arith.constant 2 : index
    %c0_95 = arith.constant 0 : index
    %c0_96 = arith.constant 0 : index
    %123 = vector.load %arg9[%c2_94, %c0_95, %c0_96] : memref<5x10x32xf32, #tpu.memory_space<vmem>>, vector<1x10x32xf32>
    %124 = vector.shape_cast %123 : vector<1x10x32xf32> to vector<10x32xf32>
    %cst_97 = arith.constant dense<0.000000e+00> : vector<10x128xf32>
    %125 = tpu.matmul %124, %122, %cst_97 {dimension_numbers = #tpu.dot_dimension_numbers<[1], [0], [0], [1], [0, 0, 1, 1], [], []>} : vector<10x32xf32>, vector<32x128xf32>, vector<10x128xf32> -> vector<10x128xf32>
    %126 = arith.addf %119, %125 : vector<10x128xf32>
    %c3 = arith.constant 3 : index
    %c0_98 = arith.constant 0 : index
    %c0_99 = arith.constant 0 : index
    %127 = vector.load %arg10[%c3, %c0_98, %c0_99] : memref<5x32x128xf32, #tpu.memory_space<vmem>>, vector<1x32x128xf32>
    %128 = vector.shape_cast %127 : vector<1x32x128xf32> to vector<32x128xf32>
    %cst_100 = arith.constant dense<0.000000e+00> : vector<32x128xf32>
    %129 = tpu.matmul %104, %128, %cst_100 {dimension_numbers = #tpu.dot_dimension_numbers<[1], [0], [0], [1], [0, 0, 1, 1], [], []>} : vector<32x32xf32>, vector<32x128xf32>, vector<32x128xf32> -> vector<32x128xf32>
    %c3_101 = arith.constant 3 : index
    %c0_102 = arith.constant 0 : index
    %c0_103 = arith.constant 0 : index
    %130 = vector.load %arg9[%c3_101, %c0_102, %c0_103] : memref<5x10x32xf32, #tpu.memory_space<vmem>>, vector<1x10x32xf32>
    %131 = vector.shape_cast %130 : vector<1x10x32xf32> to vector<10x32xf32>
    %cst_104 = arith.constant dense<0.000000e+00> : vector<10x128xf32>
    %132 = tpu.matmul %131, %129, %cst_104 {dimension_numbers = #tpu.dot_dimension_numbers<[1], [0], [0], [1], [0, 0, 1, 1], [], []>} : vector<10x32xf32>, vector<32x128xf32>, vector<10x128xf32> -> vector<10x128xf32>
    %133 = arith.addf %126, %132 : vector<10x128xf32>
    %c4 = arith.constant 4 : index
    %c0_105 = arith.constant 0 : index
    %c0_106 = arith.constant 0 : index
    %134 = vector.load %arg10[%c4, %c0_105, %c0_106] : memref<5x32x128xf32, #tpu.memory_space<vmem>>, vector<1x32x128xf32>
    %135 = vector.shape_cast %134 : vector<1x32x128xf32> to vector<32x128xf32>
    %cst_107 = arith.constant dense<0.000000e+00> : vector<32x128xf32>
    %136 = tpu.matmul %104, %135, %cst_107 {dimension_numbers = #tpu.dot_dimension_numbers<[1], [0], [0], [1], [0, 0, 1, 1], [], []>} : vector<32x32xf32>, vector<32x128xf32>, vector<32x128xf32> -> vector<32x128xf32>
    %c4_108 = arith.constant 4 : index
    %c0_109 = arith.constant 0 : index
    %c0_110 = arith.constant 0 : index
    %137 = vector.load %arg9[%c4_108, %c0_109, %c0_110] : memref<5x10x32xf32, #tpu.memory_space<vmem>>, vector<1x10x32xf32>
    %138 = vector.shape_cast %137 : vector<1x10x32xf32> to vector<10x32xf32>
    %cst_111 = arith.constant dense<0.000000e+00> : vector<10x128xf32>
    %139 = tpu.matmul %138, %136, %cst_111 {dimension_numbers = #tpu.dot_dimension_numbers<[1], [0], [0], [1], [0, 0, 1, 1], [], []>} : vector<10x32xf32>, vector<32x128xf32>, vector<10x128xf32> -> vector<10x128xf32>
    %140 = arith.addf %133, %139 : vector<10x128xf32>
    %c0_112 = arith.constant 0 : index
    %c0_113 = arith.constant 0 : index
    %141 = vector.load %arg11[%c0_112, %c0_113] : memref<1x128xf32, #tpu.memory_space<vmem>>, vector<1x128xf32>
    %c0_114 = arith.constant 0 : index
    %c0_115 = arith.constant 0 : index
    %142 = vector.load %arg12[%c0_114, %c0_115] : memref<1x128xf32, #tpu.memory_space<vmem>>, vector<1x128xf32>
    %cst_116 = arith.constant dense<0.000000e+00> : vector<128xf32>
    %143 = vector.multi_reduction <add>, %140, %cst_116 [0] : vector<10x128xf32> to vector<128xf32>
    %144 = vector.shape_cast %143 : vector<128xf32> to vector<1x128xf32>
    %cst_117 = arith.constant 1.000000e-01 : f32
    %145 = vector.broadcast %cst_117 : f32 to vector<1x128xf32>
    %146 = arith.mulf %144, %145 : vector<1x128xf32>
    %147 = arith.mulf %140, %140 : vector<10x128xf32>
    %cst_118 = arith.constant dense<0.000000e+00> : vector<128xf32>
    %148 = vector.multi_reduction <add>, %147, %cst_118 [0] : vector<10x128xf32> to vector<128xf32>
    %149 = vector.shape_cast %148 : vector<128xf32> to vector<1x128xf32>
    %cst_119 = arith.constant 1.000000e-01 : f32
    %150 = vector.broadcast %cst_119 : f32 to vector<1x128xf32>
    %151 = arith.mulf %149, %150 : vector<1x128xf32>
    %152 = arith.mulf %146, %146 : vector<1x128xf32>
    %153 = arith.subf %151, %152 : vector<1x128xf32>
    %cst_120 = arith.constant 0.000000e+00 : f32
    %154 = vector.broadcast %cst_120 : f32 to vector<1x128xf32>
    %155 = arith.maximumf %153, %154 : vector<1x128xf32>
    %cst_121 = arith.constant 9.99999974E-6 : f32
    %156 = vector.broadcast %cst_121 : f32 to vector<1x128xf32>
    %157 = arith.addf %155, %156 : vector<1x128xf32>
    %158 = math.rsqrt %157 : vector<1x128xf32>
    %159 = arith.mulf %141, %158 : vector<1x128xf32>
    %160 = arith.mulf %146, %159 : vector<1x128xf32>
    %161 = arith.subf %142, %160 : vector<1x128xf32>
    %162 = vector.broadcast %159 : vector<1x128xf32> to vector<10x128xf32>
    %163 = arith.mulf %140, %162 : vector<10x128xf32>
    %164 = vector.broadcast %161 : vector<1x128xf32> to vector<10x128xf32>
    %165 = arith.addf %163, %164 : vector<10x128xf32>
    %cst_122 = arith.constant 0.000000e+00 : f32
    %166 = vector.broadcast %cst_122 : f32 to vector<10x128xf32>
    %167 = arith.maximumf %165, %166 : vector<10x128xf32>
    %168 = vector.extract_strided_slice %167 {offsets = [0, 0], sizes = [5, 128], strides = [1, 1]} : vector<10x128xf32> to vector<5x128xf32>
    %c5 = arith.constant 5 : index
    %c0_123 = arith.constant 0 : index
    %169 = vector.load %arg17[%c5, %c0_123] : memref<32x128xf32, #tpu.memory_space<vmem>>, vector<5x128xf32>
    tpu.vector_store %arg17[%c5, %c0_123], %168 {strides = array<i32>} : memref<32x128xf32, #tpu.memory_space<vmem>>, vector<5x128xf32>,
    %170 = vector.extract_strided_slice %167 {offsets = [5, 0], sizes = [5, 128], strides = [1, 1]} : vector<10x128xf32> to vector<5x128xf32>
    %c21 = arith.constant 21 : index
    %c0_124 = arith.constant 0 : index
    %171 = vector.load %arg17[%c21, %c0_124] : memref<32x128xf32, #tpu.memory_space<vmem>>, vector<5x128xf32>
    tpu.vector_store %arg17[%c21, %c0_124], %170 {strides = array<i32>} : memref<32x128xf32, #tpu.memory_space<vmem>>, vector<5x128xf32>,
    %172 = vector.extract_strided_slice %49 {offsets = [0, 64], sizes = [32, 32], strides = [1, 1]} : vector<32x96xf32> to vector<32x32xf32>
    %cst_125 = arith.constant 0.000000e+00 : f32
    %173 = vector.broadcast %cst_125 : f32 to vector<12x128xf32>
    %c0_126 = arith.constant 0 : index
    %c0_127 = arith.constant 0 : index
    %c0_128 = arith.constant 0 : index
    %174 = vector.load %arg14[%c0_126, %c0_127, %c0_128] : memref<7x32x128xf32, #tpu.memory_space<vmem>>, vector<1x32x128xf32>
    %175 = vector.shape_cast %174 : vector<1x32x128xf32> to vector<32x128xf32>
    %cst_129 = arith.constant dense<0.000000e+00> : vector<32x128xf32>
    %176 = tpu.matmul %172, %175, %cst_129 {dimension_numbers = #tpu.dot_dimension_numbers<[1], [0], [0], [1], [0, 0, 1, 1], [], []>} : vector<32x32xf32>, vector<32x128xf32>, vector<32x128xf32> -> vector<32x128xf32>
    %c0_130 = arith.constant 0 : index
    %c0_131 = arith.constant 0 : index
    %c0_132 = arith.constant 0 : index
    %177 = vector.load %arg13[%c0_130, %c0_131, %c0_132] : memref<7x12x32xf32, #tpu.memory_space<vmem>>, vector<1x12x32xf32>
    %178 = vector.shape_cast %177 : vector<1x12x32xf32> to vector<12x32xf32>
    %cst_133 = arith.constant dense<0.000000e+00> : vector<12x128xf32>
    %179 = tpu.matmul %178, %176, %cst_133 {dimension_numbers = #tpu.dot_dimension_numbers<[1], [0], [0], [1], [0, 0, 1, 1], [], []>} : vector<12x32xf32>, vector<32x128xf32>, vector<12x128xf32> -> vector<12x128xf32>
    %180 = arith.addf %173, %179 : vector<12x128xf32>
    %c1_134 = arith.constant 1 : index
    %c0_135 = arith.constant 0 : index
    %c0_136 = arith.constant 0 : index
    %181 = vector.load %arg14[%c1_134, %c0_135, %c0_136] : memref<7x32x128xf32, #tpu.memory_space<vmem>>, vector<1x32x128xf32>
    %182 = vector.shape_cast %181 : vector<1x32x128xf32> to vector<32x128xf32>
    %cst_137 = arith.constant dense<0.000000e+00> : vector<32x128xf32>
    %183 = tpu.matmul %172, %182, %cst_137 {dimension_numbers = #tpu.dot_dimension_numbers<[1], [0], [0], [1], [0, 0, 1, 1], [], []>} : vector<32x32xf32>, vector<32x128xf32>, vector<32x128xf32> -> vector<32x128xf32>
    %c1_138 = arith.constant 1 : index
    %c0_139 = arith.constant 0 : index
    %c0_140 = arith.constant 0 : index
    %184 = vector.load %arg13[%c1_138, %c0_139, %c0_140] : memref<7x12x32xf32, #tpu.memory_space<vmem>>, vector<1x12x32xf32>
    %185 = vector.shape_cast %184 : vector<1x12x32xf32> to vector<12x32xf32>
    %cst_141 = arith.constant dense<0.000000e+00> : vector<12x128xf32>
    %186 = tpu.matmul %185, %183, %cst_141 {dimension_numbers = #tpu.dot_dimension_numbers<[1], [0], [0], [1], [0, 0, 1, 1], [], []>} : vector<12x32xf32>, vector<32x128xf32>, vector<12x128xf32> -> vector<12x128xf32>
    %187 = arith.addf %180, %186 : vector<12x128xf32>
    %c2_142 = arith.constant 2 : index
    %c0_143 = arith.constant 0 : index
    %c0_144 = arith.constant 0 : index
    %188 = vector.load %arg14[%c2_142, %c0_143, %c0_144] : memref<7x32x128xf32, #tpu.memory_space<vmem>>, vector<1x32x128xf32>
    %189 = vector.shape_cast %188 : vector<1x32x128xf32> to vector<32x128xf32>
    %cst_145 = arith.constant dense<0.000000e+00> : vector<32x128xf32>
    %190 = tpu.matmul %172, %189, %cst_145 {dimension_numbers = #tpu.dot_dimension_numbers<[1], [0], [0], [1], [0, 0, 1, 1], [], []>} : vector<32x32xf32>, vector<32x128xf32>, vector<32x128xf32> -> vector<32x128xf32>
    %c2_146 = arith.constant 2 : index
    %c0_147 = arith.constant 0 : index
    %c0_148 = arith.constant 0 : index
    %191 = vector.load %arg13[%c2_146, %c0_147, %c0_148] : memref<7x12x32xf32, #tpu.memory_space<vmem>>, vector<1x12x32xf32>
    %192 = vector.shape_cast %191 : vector<1x12x32xf32> to vector<12x32xf32>
    %cst_149 = arith.constant dense<0.000000e+00> : vector<12x128xf32>
    %193 = tpu.matmul %192, %190, %cst_149 {dimension_numbers = #tpu.dot_dimension_numbers<[1], [0], [0], [1], [0, 0, 1, 1], [], []>} : vector<12x32xf32>, vector<32x128xf32>, vector<12x128xf32> -> vector<12x128xf32>
    %194 = arith.addf %187, %193 : vector<12x128xf32>
    %c3_150 = arith.constant 3 : index
    %c0_151 = arith.constant 0 : index
    %c0_152 = arith.constant 0 : index
    %195 = vector.load %arg14[%c3_150, %c0_151, %c0_152] : memref<7x32x128xf32, #tpu.memory_space<vmem>>, vector<1x32x128xf32>
    %196 = vector.shape_cast %195 : vector<1x32x128xf32> to vector<32x128xf32>
    %cst_153 = arith.constant dense<0.000000e+00> : vector<32x128xf32>
    %197 = tpu.matmul %172, %196, %cst_153 {dimension_numbers = #tpu.dot_dimension_numbers<[1], [0], [0], [1], [0, 0, 1, 1], [], []>} : vector<32x32xf32>, vector<32x128xf32>, vector<32x128xf32> -> vector<32x128xf32>
    %c3_154 = arith.constant 3 : index
    %c0_155 = arith.constant 0 : index
    %c0_156 = arith.constant 0 : index
    %198 = vector.load %arg13[%c3_154, %c0_155, %c0_156] : memref<7x12x32xf32, #tpu.memory_space<vmem>>, vector<1x12x32xf32>
    %199 = vector.shape_cast %198 : vector<1x12x32xf32> to vector<12x32xf32>
    %cst_157 = arith.constant dense<0.000000e+00> : vector<12x128xf32>
    %200 = tpu.matmul %199, %197, %cst_157 {dimension_numbers = #tpu.dot_dimension_numbers<[1], [0], [0], [1], [0, 0, 1, 1], [], []>} : vector<12x32xf32>, vector<32x128xf32>, vector<12x128xf32> -> vector<12x128xf32>
    %201 = arith.addf %194, %200 : vector<12x128xf32>
    %c4_158 = arith.constant 4 : index
    %c0_159 = arith.constant 0 : index
    %c0_160 = arith.constant 0 : index
    %202 = vector.load %arg14[%c4_158, %c0_159, %c0_160] : memref<7x32x128xf32, #tpu.memory_space<vmem>>, vector<1x32x128xf32>
    %203 = vector.shape_cast %202 : vector<1x32x128xf32> to vector<32x128xf32>
    %cst_161 = arith.constant dense<0.000000e+00> : vector<32x128xf32>
    %204 = tpu.matmul %172, %203, %cst_161 {dimension_numbers = #tpu.dot_dimension_numbers<[1], [0], [0], [1], [0, 0, 1, 1], [], []>} : vector<32x32xf32>, vector<32x128xf32>, vector<32x128xf32> -> vector<32x128xf32>
    %c4_162 = arith.constant 4 : index
    %c0_163 = arith.constant 0 : index
    %c0_164 = arith.constant 0 : index
    %205 = vector.load %arg13[%c4_162, %c0_163, %c0_164] : memref<7x12x32xf32, #tpu.memory_space<vmem>>, vector<1x12x32xf32>
    %206 = vector.shape_cast %205 : vector<1x12x32xf32> to vector<12x32xf32>
    %cst_165 = arith.constant dense<0.000000e+00> : vector<12x128xf32>
    %207 = tpu.matmul %206, %204, %cst_165 {dimension_numbers = #tpu.dot_dimension_numbers<[1], [0], [0], [1], [0, 0, 1, 1], [], []>} : vector<12x32xf32>, vector<32x128xf32>, vector<12x128xf32> -> vector<12x128xf32>
    %208 = arith.addf %201, %207 : vector<12x128xf32>
    %c5_166 = arith.constant 5 : index
    %c0_167 = arith.constant 0 : index
    %c0_168 = arith.constant 0 : index
    %209 = vector.load %arg14[%c5_166, %c0_167, %c0_168] : memref<7x32x128xf32, #tpu.memory_space<vmem>>, vector<1x32x128xf32>
    %210 = vector.shape_cast %209 : vector<1x32x128xf32> to vector<32x128xf32>
    %cst_169 = arith.constant dense<0.000000e+00> : vector<32x128xf32>
    %211 = tpu.matmul %172, %210, %cst_169 {dimension_numbers = #tpu.dot_dimension_numbers<[1], [0], [0], [1], [0, 0, 1, 1], [], []>} : vector<32x32xf32>, vector<32x128xf32>, vector<32x128xf32> -> vector<32x128xf32>
    %c5_170 = arith.constant 5 : index
    %c0_171 = arith.constant 0 : index
    %c0_172 = arith.constant 0 : index
    %212 = vector.load %arg13[%c5_170, %c0_171, %c0_172] : memref<7x12x32xf32, #tpu.memory_space<vmem>>, vector<1x12x32xf32>
    %213 = vector.shape_cast %212 : vector<1x12x32xf32> to vector<12x32xf32>
    %cst_173 = arith.constant dense<0.000000e+00> : vector<12x128xf32>
    %214 = tpu.matmul %213, %211, %cst_173 {dimension_numbers = #tpu.dot_dimension_numbers<[1], [0], [0], [1], [0, 0, 1, 1], [], []>} : vector<12x32xf32>, vector<32x128xf32>, vector<12x128xf32> -> vector<12x128xf32>
    %215 = arith.addf %208, %214 : vector<12x128xf32>
    %c6 = arith.constant 6 : index
    %c0_174 = arith.constant 0 : index
    %c0_175 = arith.constant 0 : index
    %216 = vector.load %arg14[%c6, %c0_174, %c0_175] : memref<7x32x128xf32, #tpu.memory_space<vmem>>, vector<1x32x128xf32>
    %217 = vector.shape_cast %216 : vector<1x32x128xf32> to vector<32x128xf32>
    %cst_176 = arith.constant dense<0.000000e+00> : vector<32x128xf32>
    %218 = tpu.matmul %172, %217, %cst_176 {dimension_numbers = #tpu.dot_dimension_numbers<[1], [0], [0], [1], [0, 0, 1, 1], [], []>} : vector<32x32xf32>, vector<32x128xf32>, vector<32x128xf32> -> vector<32x128xf32>
    %c6_177 = arith.constant 6 : index
    %c0_178 = arith.constant 0 : index
    %c0_179 = arith.constant 0 : index
    %219 = vector.load %arg13[%c6_177, %c0_178, %c0_179] : memref<7x12x32xf32, #tpu.memory_space<vmem>>, vector<1x12x32xf32>
    %220 = vector.shape_cast %219 : vector<1x12x32xf32> to vector<12x32xf32>
    %cst_180 = arith.constant dense<0.000000e+00> : vector<12x128xf32>
    %221 = tpu.matmul %220, %218, %cst_180 {dimension_numbers = #tpu.dot_dimension_numbers<[1], [0], [0], [1], [0, 0, 1, 1], [], []>} : vector<12x32xf32>, vector<32x128xf32>, vector<12x128xf32> -> vector<12x128xf32>
    %222 = arith.addf %215, %221 : vector<12x128xf32>
    %c0_181 = arith.constant 0 : index
    %c0_182 = arith.constant 0 : index
    %223 = vector.load %arg15[%c0_181, %c0_182] : memref<1x128xf32, #tpu.memory_space<vmem>>, vector<1x128xf32>
    %c0_183 = arith.constant 0 : index
    %c0_184 = arith.constant 0 : index
    %224 = vector.load %arg16[%c0_183, %c0_184] : memref<1x128xf32, #tpu.memory_space<vmem>>, vector<1x128xf32>
    %cst_185 = arith.constant dense<0.000000e+00> : vector<128xf32>
    %225 = vector.multi_reduction <add>, %222, %cst_185 [0] : vector<12x128xf32> to vector<128xf32>
    %226 = vector.shape_cast %225 : vector<128xf32> to vector<1x128xf32>
    %cst_186 = arith.constant 0.0833333358 : f32
    %227 = vector.broadcast %cst_186 : f32 to vector<1x128xf32>
    %228 = arith.mulf %226, %227 : vector<1x128xf32>
    %229 = arith.mulf %222, %222 : vector<12x128xf32>
    %cst_187 = arith.constant dense<0.000000e+00> : vector<128xf32>
    %230 = vector.multi_reduction <add>, %229, %cst_187 [0] : vector<12x128xf32> to vector<128xf32>
    %231 = vector.shape_cast %230 : vector<128xf32> to vector<1x128xf32>
    %cst_188 = arith.constant 0.0833333358 : f32
    %232 = vector.broadcast %cst_188 : f32 to vector<1x128xf32>
    %233 = arith.mulf %231, %232 : vector<1x128xf32>
    %234 = arith.mulf %228, %228 : vector<1x128xf32>
    %235 = arith.subf %233, %234 : vector<1x128xf32>
    %cst_189 = arith.constant 0.000000e+00 : f32
    %236 = vector.broadcast %cst_189 : f32 to vector<1x128xf32>
    %237 = arith.maximumf %235, %236 : vector<1x128xf32>
    %cst_190 = arith.constant 9.99999974E-6 : f32
    %238 = vector.broadcast %cst_190 : f32 to vector<1x128xf32>
    %239 = arith.addf %237, %238 : vector<1x128xf32>
    %240 = math.rsqrt %239 : vector<1x128xf32>
    %241 = arith.mulf %223, %240 : vector<1x128xf32>
    %242 = arith.mulf %228, %241 : vector<1x128xf32>
    %243 = arith.subf %224, %242 : vector<1x128xf32>
    %244 = vector.broadcast %241 : vector<1x128xf32> to vector<12x128xf32>
    %245 = arith.mulf %222, %244 : vector<12x128xf32>
    %246 = vector.broadcast %243 : vector<1x128xf32> to vector<12x128xf32>
    %247 = arith.addf %245, %246 : vector<12x128xf32>
    %cst_191 = arith.constant 0.000000e+00 : f32
    %248 = vector.broadcast %cst_191 : f32 to vector<12x128xf32>
    %249 = arith.maximumf %247, %248 : vector<12x128xf32>
    %250 = vector.extract_strided_slice %249 {offsets = [0, 0], sizes = [6, 128], strides = [1, 1]} : vector<12x128xf32> to vector<6x128xf32>
    %c10 = arith.constant 10 : index
    %c0_192 = arith.constant 0 : index
    %251 = vector.load %arg17[%c10, %c0_192] : memref<32x128xf32, #tpu.memory_space<vmem>>, vector<6x128xf32>
    tpu.vector_store %arg17[%c10, %c0_192], %250 {strides = array<i32>} : memref<32x128xf32, #tpu.memory_space<vmem>>, vector<6x128xf32>,
    %252 = vector.extract_strided_slice %249 {offsets = [6, 0], sizes = [6, 128], strides = [1, 1]} : vector<12x128xf32> to vector<6x128xf32>
    %c26 = arith.constant 26 : index
    %c0_193 = arith.constant 0 : index
    %253 = vector.load %arg17[%c26, %c0_193] : memref<32x128xf32, #tpu.memory_space<vmem>>, vector<6x128xf32>
    tpu.vector_store %arg17[%c26, %c0_193], %252 {strides = array<i32>} : memref<32x128xf32, #tpu.memory_space<vmem>>, vector<6x128xf32>,
    return
  }
}

</mosaic_0001>

<bundles_post_ra>
// kernel: generator_forward.1
= control target key start
LH: loop header
LB: loop body
LE: loop exit
PB: predicated region body
PF: predicated region fallthrough
CT: control target
= control target key end

     0   :  { %s2574_s0 = inlined_call_operand.vmem [shape: f32[32,4], index: 0, kind: input, shape index: {}]   ;;  %s2575_s1 = inlined_call_operand.hbm [shape: f32[3,32,32], index: 1, kind: input, shape index: {}]   ;;  %s2576_s2 = inlined_call_operand.hbm [shape: f32[3,4,96], index: 2, kind: input, shape index: {}]   ;;  %s2577_s3 = inlined_call_operand.vmem [shape: f32[1,96], index: 3, kind: input, shape index: {}]   ;;  %s2578_s4 = inlined_call_operand.vmem [shape: f32[1,96], index: 4, kind: input, shape index: {}]   ;;  %s2579_s5 = inlined_call_operand.vmem [shape: f32[3,10,32], index: 5, kind: input, shape index: {}]   ;;  %s2580_s6 = inlined_call_operand.hbm [shape: f32[3,32,128], index: 6, kind: input, shape index: {}]   ;;  %s2581_s7 = inlined_call_operand.vmem [shape: f32[1,128], index: 7, kind: input, shape index: {}]   ;;  %s2582_s8 = inlined_call_operand.vmem [shape: f32[1,128], index: 8, kind: input, shape index: {}]   ;;  %s2583_s9 = inlined_call_operand.hbm [shape: f32[5,10,32], index: 9, kind: input, shape index: {}]   ;;  %s2584_s10 = inlined_call_operand.hbm [shape: f32[5,32,128], index: 10, kind: input, shape index: {}]   ;;  %s2585_s11 = inlined_call_operand.vmem [shape: f32[1,128], index: 11, kind: input, shape index: {}]   ;;  %s2586_s12 = inlined_call_operand.vmem [shape: f32[1,128], index: 12, kind: input, shape index: {}]   ;;  %s2587_s13 = inlined_call_operand.hbm [shape: f32[7,12,32], index: 13, kind: input, shape index: {}]   ;;  %s2588_s14 = inlined_call_operand.hbm [shape: f32[7,32,128], index: 14, kind: input, shape index: {}]   ;;  %s2589_s15 = inlined_call_operand.vmem [shape: f32[1,128], index: 15, kind: input, shape index: {}]   ;;  %s2590_s16 = inlined_call_operand.hbm [shape: f32[1,128], index: 16, kind: input, shape index: {}]   ;;  %s2591_s17 = inlined_call_operand.hbm [shape: f32[32,128], index: 17, kind: output, shape index: {}]  }
   0x1   :  { %2593 = sst [smem:[#allocation23_spill]] %s2574_s0 }
   0x2   :  { %2594 = sst [smem:[#allocation24_spill]] %s2575_s1 }
   0x3   :  { %22 = vsyncpa [#allocation3], 0 }
   0x4   :  { %23 = vsyncpa [#allocation6], 0 }
   0x5   :  { %24 = vsyncpa [#allocation9], 0 }
   0x6   :  { %25 = vsyncpa [#allocation12], 0 }
   0x7   :  { %26 = vsyncpa [#allocation15], 0  ;;  %s47_s26 = sshll.u32 %s2576_s2, 4  ;;  %s48_s26 = int_to_ptr.hbm [resolvable:$true] %s47_s26 }
   0x8   :  { %27 = vsyncpa [#allocation4], 0  ;;  %s2115_s27 = smov [#allocation5]   ;;  %s2116_s29 = smov 64  }
   0x9   :  { %s49_s28 = sshll.u32 %s2115_s27, 4  ;;  %s2117_s0 = smov 4   ;;  %s50_s28 = int_to_ptr.vmem [resolvable:$true] %s49_s28 }
   0xa   :  { %55 = dma.hbm_to_vmem [thread:$0]  %s48_s26, 192, %s50_s28, [#allocation6], %s2116_s29, %s2116_s29, %s2117_s0  }
   0xb   :  { %s83_s19 = sshll.u32 %s2583_s9, 4  ;;  %s2118_s1 = smov [#allocation8]   ;;  %s84_s19 = int_to_ptr.hbm [resolvable:$true] %s83_s19 }
   0xc   :  { %s85_s20 = sshll.u32 %s2118_s1, 4  ;;  %s113_s2 = sshll.u32 %s2587_s13, 4  ;;  %s86_s20 = int_to_ptr.vmem [resolvable:$true] %s85_s20  ;;  %s114_s2 = int_to_ptr.hbm [resolvable:$true] %s113_s2 }
   0xd   :  { %s2119_s23 = smov 128   ;;  %s2120_s24 = smov 8  }
   0xe   :  { %91 = dma.hbm_to_vmem [thread:$0]  %s84_s19, 1280, %s86_s20, [#allocation9], %s2119_s23, %s2119_s23, %s2120_s24  }
   0xf   :  { %s2595_s27 = sld [smem:[#allocation24_spill]]  ;;  %s2121_s9 = smov [#allocation11]  }
  0x10   :  { %s115_s0 = sshll.u32 %s2121_s9, 4  ;;  %s2122_s13 = smov [#allocation2]   ;;  %s116_s0 = int_to_ptr.vmem [resolvable:$true] %s115_s0 }
  0x11   :  { %121 = dma.hbm_to_vmem [thread:$0]  %s114_s2, 1792, %s116_s0, [#allocation12], %s2119_s23, %s2119_s23, %s2120_s24  }
  0x12   :  { %s36_s30 = sshll.u32 %s2122_s13, 4  ;;  %s66_s21 = sshll.u32 %s2580_s6, 4  ;;  %s37_s30 = int_to_ptr.vmem [resolvable:$true] %s36_s30  ;;  %s67_s21 = int_to_ptr.hbm [resolvable:$true] %s66_s21 }
  0x13   :  { %s96_s22 = sshll.u32 %s2584_s10, 4  ;;  %s2123_s25 = smov [#allocation7]   ;;  %s97_s22 = int_to_ptr.hbm [resolvable:$true] %s96_s22 }
  0x14   :  { %s68_s26 = sshll.u32 %s2123_s25, 4  ;;  %s2124_s2 = smov [#allocation10]   ;;  %s69_s26 = int_to_ptr.vmem [resolvable:$true] %s68_s26 }
  0x15   :  { %s34_s28 = sshll.u32 %s2595_s27, 4  ;;  %s98_s6 = sshll.u32 %s2124_s2, 4  ;;  %s35_s28 = int_to_ptr.hbm [resolvable:$true] %s34_s28  ;;  %s99_s6 = int_to_ptr.vmem [resolvable:$true] %s98_s6 }
  0x16   :  { %42 = dma.hbm_to_vmem [thread:$0]  %s35_s28, 1536, %s37_s30, [#allocation3], %s2119_s23, %s2119_s23, %s2120_s24  }
  0x17   :  { %74 = dma.hbm_to_vmem [thread:$0]  %s67_s21, 1536, %s69_s26, [#allocation6], %s2119_s23, %s2119_s23, %s2120_s24  }
  0x18   :  { %s126_s0 = sshll.u32 %s2588_s14, 4  ;;  %s142_s13 = sshll.u32 %s2590_s16, 4  ;;  %s127_s0 = int_to_ptr.hbm [resolvable:$true] %s126_s0  ;;  %s143_s13 = int_to_ptr.hbm [resolvable:$true] %s142_s13 }
  0x19   :  { %104 = dma.hbm_to_vmem [thread:$0]  %s97_s22, 2560, %s99_s6, [#allocation9], %s2119_s23, %s2119_s23, %s2120_s24  }
  0x1a   :  { %s2125_s30 = smov [#allocation13]   ;;  %s2126_s1 = smov [#allocation14]  }
  0x1b   :  { %s128_s18 = sshll.u32 %s2125_s30, 4  ;;  %s144_s14 = sshll.u32 %s2126_s1, 4  ;;  %s129_s18 = int_to_ptr.vmem [resolvable:$true] %s128_s18  ;;  %s145_s14 = int_to_ptr.vmem [resolvable:$true] %s144_s14 }
  0x1c   :  { %134 = dma.hbm_to_vmem [thread:$0]  %s127_s0, 3584, %s129_s18, [#allocation12], %s2119_s23, %s2119_s23, %s2120_s24  }
  0x1d   :  { %147 = dma.hbm_to_vmem [thread:$0]  %s143_s13, 16, %s145_s14, [#allocation15]  }
  0x1e   :  { %2103 = dma.done.wait [#allocation3], 1536  }
  0x1f   :  { %2104 = vsyncadd [#allocation3], 4294965760 }
  0x20   :  { %2105 = dma.done.wait [#allocation6], 1728  }
  0x21   :  { %2106 = vsyncadd [#allocation6], 4294965568 }
  0x22   :  { %2107 = dma.done.wait [#allocation9], 3840  }
  0x23   :  { %2108 = vsyncadd [#allocation9], 4294963456 }
  0x24   :  { %2109 = dma.done.wait [#allocation12], 5376  }
  0x25   :  { %2110 = vsyncadd [#allocation12], 4294961920 }
  0x26   :  { %2111 = dma.done.wait [#allocation15], 16  }
  0x27   :  { %2112 = vsyncadd [#allocation15], 4294967280  ;;  %vm198_vm0 = vcmask 1043456   ;;  %vm185_vm1 = vcmask 31744   ;;  %v184_v0 = vld [vmem:[#allocation5] sm:$0xf] }
  0x28   :  { %s2596_s19 = sld [smem:[#allocation23_spill]]  ;;  %1743 = vmatpush.msk.msra.mxu0 %vm198_vm0, %v184_v0  ;;  %v236_v2 = vld [vmem:[#allocation5 + $0x4] sm:$0xf]  ;;  %v358_v4 = vld [vmem:[#allocation5 + $0x8] sm:$0xf]  ;;  %vm274_vm2 = vcmask 261120  }
  0x29   :  { %1864 = vmatpush.msk.msra.mxu1 %vm198_vm0, %v236_v2  ;;  %v231_v14 = vld [vmem:[#allocation2] sm:$0xff]  ;;  %v271_v17 = vld [vmem:[#allocation2 + $0x28] sm:$0xff]  ;;  %v233_v20 = vld [vmem:[#allocation2 + $0x10] sm:$0xff]  ;;  %vm443_vm3 = vcmask 785408   ;;  %vm723_vm7 = vcmask 1041408   ;;  %s2128_s27 = smov [#allocation16]  }
  0x2a   :  { %1748 = vmatpush.msk.msrb.mxu0 %vm198_vm0, %v236_v2  ;;  %v270_v15 = vld [vmem:[#allocation2 + $0x20] sm:$0xff]  ;;  %v232_v18 = vld [vmem:[#allocation2 + $0x8] sm:$0xff]  ;;  %v272_v21 = vld [vmem:[#allocation2 + $0x30] sm:$0xff]  ;;  %s1724_s9 = sshll.u32 %s2128_s27, 4  ;;  %s1725_s9 = int_to_ptr.vmem [resolvable:$true] %s1724_s9 }
  0x2b   :  { %v234_v23 = vld [vmem:[#allocation2 + $0x18] sm:$0xff]  ;;  %v392_v27 = vld [vmem:[#allocation2 + $0x40] sm:$0xff]  ;;  %v393_v28 = vld [vmem:[#allocation2 + $0x48] sm:$0xff] }
  0x2c   :  { %v273_v24 = vld [vmem:[#allocation2 + $0x38] sm:$0xff]  ;;  %v394_v29 = vld [vmem:[#allocation2 + $0x50] sm:$0xff] }
  0x2d   :  { %v395_v30 = vld [vmem:[#allocation2 + $0x58] sm:$0xff] }
  0x2e   :  { %v180_v1 = vld [vmem:[%s2596_s19] sm:$0xff]  ;;  %v181_v3 = vld [vmem:[%s2596_s19 + $0x8] sm:$0xff]  ;;  %v182_v5 = vld [vmem:[%s2596_s19 + $0x10] sm:$0xff] }
  0x2f   :  { %1744 = vmatmul.msk.f32.vlgmr.msra.gmra.mxu0 %vm185_vm1, %v180_v1  ;;  %1750 = vmatmul.msk.f32.vlgmr.msra.gmra.mxu1 %vm185_vm1, %v181_v3  ;;  %v183_v6 = vld [vmem:[%s2596_s19 + $0x18] sm:$0xff] }
  0x30   :  { %1761 = vmatpush.msk.msra.mxu0 %vm198_vm0, %v358_v4 }
  0x37   :  { %1745 = vmatmul.msk.f32.gmra.mxu0 %vm185_vm1, %v181_v3  ;;  %1751 = vmatmul.msk.f32.gmra.mxu1 %vm185_vm1, %v182_v5 }
  0x3f   :  { %1746 = vmatmul.msk.f32.gmra.mxu0 %vm185_vm1, %v182_v5  ;;  %1752 = vmatmul.msk.f32.gmra.mxu1 %vm185_vm1, %v183_v6 }
  0x47   :  { %1747 = vmatmul.msk.f32.gmra.mxu0 %vm185_vm1, %v183_v6 }
  0x4f   :  { %1749 = vmatmul.msk.f32.vlgmr.msrb.gmra.mxu0 %vm185_vm1, %v180_v1 }
  0x57   :  { %1762 = vmatmul.msk.f32.vlgmr.msra.gmra.mxu0 %vm185_vm1, %v180_v1 }
  0x5f   :  { %1763 = vmatmul.msk.f32.gmra.mxu0 %vm185_vm1, %v181_v3 }
  0x67   :  { %1764 = vmatmul.msk.f32.gmra.mxu0 %vm185_vm1, %v182_v5 }
  0x6f   :  { %1765 = vmatmul.msk.f32.gmra.mxu0 %vm185_vm1, %v183_v6 }
  0xac   :  { %v219_v7 = vpop.f32.mrf.mxu0  ;;  %v260_v8 = vpop.f32.mrf.mxu1 }
  0xb4   :  { %v222_v9 = vpop.f32.mrf.mxu0  ;;  %v263_v10 = vpop.f32.mrf.mxu1 }
  0xbc   :  { %v225_v11 = vpop.f32.mrf.mxu0  ;;  %v266_v12 = vpop.f32.mrf.mxu1 }
  0xbd   :  { %299 = vmatpush.msra.mxu2 %v266_v12 }
  0xbf   :  { %300 = vmatpush.msra.mxu2 %v263_v10 }
  0xc1   :  { %301 = vmatpush.msra.mxu2 %v260_v8 }
  0xc4   :  { %v228_v13 = vpop.f32.mrf.mxu0 }
  0xc5   :  { %340 = vmatpush.msra.mxu3 %v228_v13 }
  0xc7   :  { %341 = vmatpush.msra.mxu3 %v225_v11 }
  0xc9   :  { %342 = vmatpush.msra.mxu3 %v222_v9 }
  0xcb   :  { %343 = vmatpush.msra.mxu3 %v219_v7 }
  0xcc   :  { %v257_v16 = vpop.f32.mrf.mxu0  ;;  %1757 = vmatmul.msk.f32.vlgmr.msra.gmra.mxu3 %vm274_vm2, %v231_v14 }
  0xcd   :  { %302 = vmatpush.msra.mxu2 %v257_v16 }
  0xce   :  { %1753 = vmatmul.msk.f32.vlgmr.msra.gmra.mxu2 %vm274_vm2, %v270_v15 }
  0xd4   :  { %v379_v19 = vpop.f32.mrf.mxu0  ;;  %1758 = vmatmul.msk.f32.gmra.mxu3 %vm274_vm2, %v232_v18  ;;  %v514_v18 = vld [vmem:[#allocation7 + $0x18] sm:$0xff] }
  0xd5   :  { %539 = vmatpush.msrb.mxu2 %v514_v18 }
  0xd6   :  { %1754 = vmatmul.msk.f32.gmra.mxu2 %vm274_vm2, %v271_v17 }
  0xdc   :  { %v382_v22 = vpop.f32.mrf.mxu0  ;;  %1759 = vmatmul.msk.f32.gmra.mxu3 %vm274_vm2, %v233_v20 }
  0xde   :  { %1755 = vmatmul.msk.f32.gmra.mxu2 %vm274_vm2, %v272_v21 }
  0xe4   :  { %v385_v25 = vpop.f32.mrf.mxu0  ;;  %1760 = vmatmul.msk.f32.gmra.mxu3 %vm274_vm2, %v234_v23  ;;  %v561_v23 = vld [vmem:[#allocation7 + $0x30] sm:$0xff] }
  0xe6   :  { %1756 = vmatmul.msk.f32.gmra.mxu2 %vm274_vm2, %v273_v24 }
  0xec   :  { %v388_v26 = vpop.f32.mrf.mxu0 }
  0xed   :  { %420 = vmatpush.msrb.mxu1 %v388_v26  ;;  %v560_v26 = vld [vmem:[#allocation7 + $0x28] sm:$0xff] }
  0xef   :  { %421 = vmatpush.msrb.mxu1 %v385_v25  ;;  %v512_v25 = vld [vmem:[#allocation7 + $0x8] sm:$0xff] }
  0xf1   :  { %422 = vmatpush.msrb.mxu1 %v382_v22  ;;  %v513_v22 = vld [vmem:[#allocation7 + $0x10] sm:$0xff] }
  0xf2   :  { %540 = vmatpush.msrb.mxu2 %v513_v22 }
  0xf3   :  { %423 = vmatpush.msrb.mxu1 %v379_v19  ;;  %v562_v19 = vld [vmem:[#allocation7 + $0x38] sm:$0xff] }
  0xf4   :  { %1766 = vmatmul.msk.f32.vlgmr.msrb.gmra.mxu1 %vm274_vm2, %v392_v27  ;;  %575 = vmatpush.msrb.mxu3 %v562_v19  ;;  %v994_v19 = vld [vmem:[#allocation10 + $0x78] sm:$0xff] }
  0xf5   :  { %541 = vmatpush.msrb.mxu2 %v512_v25 }
  0xf6   :  { %576 = vmatpush.msrb.mxu3 %v561_v23  ;;  %v991_v23 = vld [vmem:[#allocation10 + $0x60] sm:$0xff] }
  0xf8   :  { %577 = vmatpush.msrb.mxu3 %v560_v26 }
  0xfc   :  { %1767 = vmatmul.msk.f32.gmra.mxu1 %vm274_vm2, %v393_v28  ;;  %v511_v28 = vld [vmem:[#allocation7] sm:$0xff] }
  0xfd   :  { %542 = vmatpush.msrb.mxu2 %v511_v28  ;;  %v1788_v28 = vld [vmem:[%s2579_s5 + $0x20] sm:$0xff] }
 0x104   :  { %1768 = vmatmul.msk.f32.gmra.mxu1 %vm274_vm2, %v394_v29  ;;  %v559_v29 = vld [vmem:[#allocation7 + $0x20] sm:$0xff] }
 0x105   :  { %578 = vmatpush.msrb.mxu3 %v559_v29  ;;  %v1789_v29 = vld [vmem:[%s2579_s5 + $0x28] sm:$0x3] }
 0x10c   :  { %1769 = vmatmul.msk.f32.gmra.mxu1 %vm274_vm2, %v395_v30 }
 0x14f   :  { %v345_v31 = vpop.f32.mrf.mxu3 }
 0x151   :  { %v304_v32 = vpop.f32.mrf.mxu2 }
 0x152   :  { %v346_v40 = vadd.f32 %v345_v31, %v304_v32 }
 0x157   :  { %v348_v33 = vpop.f32.mrf.mxu3 }
 0x159   :  { %v307_v34 = vpop.f32.mrf.mxu2 }
 0x15a   :  { %v349_v39 = vadd.f32 %v348_v33, %v307_v34 }
 0x15f   :  { %v351_v36 = vpop.f32.mrf.mxu3 }
 0x161   :  { %v310_v38 = vpop.f32.mrf.mxu2 }
 0x162   :  { %v352_v41 = vadd.f32 %v351_v36, %v310_v38  ;;  %v441_v36 = vld [vmem:[%s2577_s3] sm:$0x1]  ;;  %s2127_s3 = smov 96  }
 0x167   :  { %v354_v47 = vpop.f32.mrf.mxu3 }
 0x169   :  { %v313_v46 = vpop.f32.mrf.mxu2 }
 0x16a   :  { %v355_v52 = vadd.f32 %v354_v47, %v313_v46 }
 0x171   :  { %v425_v35 = vpop.f32.mrf.mxu1 }
 0x172   :  { %v2305_v44 = vadd.f32 %v425_v35, %v346_v40  ;;  %v442_v40 = vld [vmem:[%s2578_s4] sm:$0x1] }
 0x174   :  { %v458_v49 = vmul.f32 %v2305_v44, %v2305_v44  ;;  %v444_v53 = vsel %vm443_vm3, %v2305_v44, 0.0 }
 0x176   :  { %v462_v58 = vsel %vm443_vm3, %v458_v49, 0.0 }
 0x179   :  { %v428_v37 = vpop.f32.mrf.mxu1 }
 0x17a   :  { %v2303_v42 = vadd.f32 %v428_v37, %v349_v39 }
 0x17c   :  { %v459_v48 = vmul.f32 %v2303_v42, %v2303_v42  ;;  %v445_v50 = vsel %vm443_vm3, %v2303_v42, 0.0 }
 0x17d   :  { %v446_v56 = vadd.f32 %v445_v50, %v444_v53  ;;  %v657_v50 = vld [vmem:[#allocation7 + $0x58] sm:$0xff] }
 0x17e   :  { %v463_v54 = vsel %vm443_vm3, %v459_v48, 0.0  ;;  %670 = vmatpush.msra.mxu2 %v657_v50 }
 0x17f   :  { %v464_v61 = vadd.f32 %v463_v54, %v462_v58  ;;  %v655_v54 = vld [vmem:[#allocation7 + $0x48] sm:$0xff] }
 0x181   :  { %v431_v43 = vpop.f32.mrf.mxu1 }
 0x182   :  { %v2307_v45 = vadd.f32 %v431_v43, %v352_v41 }
 0x184   :  { %v460_v51 = vmul.f32 %v2307_v45, %v2307_v45  ;;  %v447_v55 = vsel %vm443_vm3, %v2307_v45, 0.0 }
 0x185   :  { %v448_v62 = vadd.f32 %v447_v55, %v446_v56 }
 0x186   :  { %v465_v59 = vsel %vm443_vm3, %v460_v51, 0.0  ;;  %v656_v51 = vld [vmem:[#allocation7 + $0x50] sm:$0xff] }
 0x187   :  { %v466_v1 = vadd.f32 %v465_v59, %v464_v61  ;;  %671 = vmatpush.msra.mxu2 %v656_v51 }
 0x189   :  { %v434_v57 = vpop.f32.mrf.mxu1  ;;  %672 = vmatpush.msra.mxu2 %v655_v54 }
 0x18a   :  { %v2324_v60 = vadd.f32 %v434_v57, %v355_v52  ;;  %v654_v57 = vld [vmem:[#allocation7 + $0x40] sm:$0xff] }
 0x18b   :  { %673 = vmatpush.msra.mxu2 %v654_v57  ;;  %v862_v57 = vld [vmem:[#allocation8 + $0x10] sm:$0xff] }
 0x18c   :  { %v449_v63 = vsel %vm443_vm3, %v2324_v60, 0.0  ;;  %v461_v0 = vmul.f32 %v2324_v60, %v2324_v60 }
 0x18d   :  { %v450_v2 = vadd.f32 %v449_v63, %v448_v62 }
 0x18e   :  { %v467_v3 = vsel %vm443_vm3, %v461_v0, 0.0 }
 0x18f   :  { %v451_v4 = vrot.slane %v450_v2, 4  ;;  %v468_v5 = vadd.f32 %v467_v3, %v466_v1 }
 0x191   :  { %v452_v6 = vadd.f32 %v451_v4, %v450_v2  ;;  %v469_v7 = vrot.slane %v468_v5, 4 }
 0x193   :  { %v453_v8 = vrot.slane %v452_v6, 2  ;;  %v470_v9 = vadd.f32 %v469_v7, %v468_v5  ;;  %v556_v5 = vld [vmem:[%s2579_s5] sm:$0xff]  ;;  %v831_v7 = vld [vmem:[#allocation10 + $0x38] sm:$0xff] }
 0x195   :  { %v454_v10 = vadd.f32 %v453_v8, %v452_v6  ;;  %v471_v11 = vrot.slane %v470_v9, 2  ;;  %v1778_v6 = vld [vmem:[%s2579_s5 + $0x10] sm:$0xff] }
 0x196   :  { %v779_v8 = vld [vmem:[#allocation10 + $0x18] sm:$0xff] }
 0x197   :  { %v455_v12 = vrot.slane %v454_v10, 1  ;;  %v472_v13 = vadd.f32 %v471_v11, %v470_v9  ;;  %v778_v11 = vld [vmem:[#allocation10 + $0x10] sm:$0xff] }
 0x199   :  { %v456_v14 = vadd.f32 %v455_v12, %v454_v10  ;;  %v473_v15 = vrot.slane %v472_v13, 1  ;;  %v830_v10 = vld [vmem:[#allocation10 + $0x30] sm:$0xff]  ;;  %v829_v12 = vld [vmem:[#allocation10 + $0x28] sm:$0xff] }
 0x19b   :  { %v457_v16 = vmul.f32 0.03125, %v456_v14  ;;  %v474_v17 = vadd.f32 %v473_v15, %v472_v13  ;;  %v777_v13 = vld [vmem:[#allocation10 + $0x8] sm:$0xff]  ;;  %v828_v14 = vld [vmem:[#allocation10 + $0x20] sm:$0xff] }
 0x19c   :  { %v557_v15 = vld [vmem:[%s2579_s5 + $0x8] sm:$0x3] }
 0x19d   :  { %v475_v20 = vmul.f32 0.03125, %v474_v17  ;;  %v476_v21 = vmul.f32 %v457_v16, %v457_v16  ;;  %v1779_v17 = vld [vmem:[%s2579_s5 + $0x18] sm:$0x3] }
 0x19f   :  { %v477_v24 = vsub.f32 %v475_v20, %v476_v21  ;;  %v993_v20 = vld [vmem:[#allocation10 + $0x70] sm:$0xff]  ;;  %v992_v21 = vld [vmem:[#allocation10 + $0x68] sm:$0xff] }
 0x1a1   :  { %v478_v27 = vmax.f32 %v477_v24, 0.0 }
 0x1a3   :  { %v479_v30 = vadd.f32 1e-05, %v478_v27 }
 0x1a5   :  { %1879 = vrsqrt.f32 %v479_v30  ;;  %vm486_vm5 = vweird.f32 %v479_v30 }
 0x1ab   :  { %v1880_v31 = vpop.eup %1879 }
 0x1ac   :  { %v481_v32 = vmul.f32 %v1880_v31, %v479_v30  ;;  %vm487_vm4 = vweird.f32 %v1880_v31 }
 0x1ad   :  { %vm488_vm6 = vmor %vm486_vm5, %vm487_vm4 }
 0x1ae   :  { %v482_v33 = vmul.f32 %v1880_v31, %v481_v32  ;;  %v1234_v32 = vld [vmem:[#allocation13 + $0x30] sm:$0xff] }
 0x1b0   :  { %v483_v34 = vmul.f32 0.5, %v482_v33  ;;  %v1233_v33 = vld [vmem:[#allocation13 + $0x28] sm:$0xff] }
 0x1b2   :  { %v484_v35 = vsub.f32 1.5, %v483_v34  ;;  %v1232_v34 = vld [vmem:[#allocation13 + $0x20] sm:$0xff] }
 0x1b4   :  { %v485_v37 = vmul.f32 %v1880_v31, %v484_v35 }
 0x1b6   :  { %v489_v38 = vsel %vm488_vm6, %v1880_v31, %v485_v37  ;;  %v1235_v31 = vld [vmem:[#allocation13 + $0x38] sm:$0xff] }
 0x1b7   :  { %v490_v39 = vmul.f32 %v489_v38, %v441_v36 }
 0x1b9   :  { %v491_v41 = vmul.f32 %v490_v39, %v457_v16  ;;  %v494_v43 = vperm.slane %v490_v39, 0  ;;  %v776_v16 = vld [vmem:[#allocation10] sm:$0xff] }
 0x1bb   :  { %v492_v46 = vsub.f32 %v442_v40, %v491_v41  ;;  %v498_v48 = vmul.f32 %v494_v43, %v2307_v45  ;;  %v496_v49 = vmul.f32 %v494_v43, %v2305_v44  ;;  %v499_v58 = vmul.f32 %v494_v43, %v2324_v60 }
 0x1bc   :  { %v497_v45 = vmul.f32 %v494_v43, %v2303_v42 }
 0x1bd   :  { %v501_v47 = vperm.slane %v492_v46, 0 }
 0x1bf   :  { %v505_v52 = vadd.f32 %v501_v47, %v498_v48  ;;  %v503_v53 = vadd.f32 %v501_v47, %v496_v49  ;;  %v506_v44 = vadd.f32 %v501_v47, %v499_v58  ;;  %v504_v59 = vadd.f32 %v501_v47, %v497_v45 }
 0x1c1   :  { %v509_v55 = vmax.f32 %v505_v52, 0.0  ;;  %v507_v56 = vmax.f32 %v503_v53, 0.0  ;;  %v510_v61 = vmax.f32 %v506_v44, 0.0  ;;  %v508_v62 = vmax.f32 %v504_v59, 0.0  ;;  %v825_v44 = vld [vmem:[#allocation8] sm:$0xff]  ;;  %v926_v59 = vld [vmem:[#allocation10 + $0x58] sm:$0xff] }
 0x1c3   :  { %784 = vrot.lane.b32.xlu1 %v509_v55, %s2127_s3  ;;  %1184 = vrot.lane.b32.xlu2 %v507_v56, %s2116_s29 }
 0x1c4   :  { %780 = vrot.lane.b32.xlu0 %v507_v56, %s2127_s3  ;;  %1770 = vmatmul.msk.f32.vlgmr.msrb.gmra.mxu2 %vm274_vm2, %v507_v56 }
 0x1c5   :  { %1774 = vmatmul.msk.f32.vlgmr.msrb.gmra.mxu3 %vm274_vm2, %v507_v56 }
 0x1cb   :  { %786 = vrot.lane.b32.xlu1 %v510_v61, %s2127_s3  ;;  %1186 = vrot.lane.b32.xlu2 %v508_v62, %s2116_s29 }
 0x1cc   :  { %782 = vrot.lane.b32.xlu0 %v508_v62, %s2127_s3  ;;  %1771 = vmatmul.msk.f32.gmra.mxu2 %vm274_vm2, %v508_v62 }
 0x1cd   :  { %1775 = vmatmul.msk.f32.gmra.mxu3 %vm274_vm2, %v508_v62 }
 0x1d3   :  { %1190 = vrot.lane.b32.xlu1 %v510_v61, %s2116_s29 }
 0x1d4   :  { %1188 = vrot.lane.b32.xlu0 %v509_v55, %s2116_s29  ;;  %1772 = vmatmul.msk.f32.gmra.mxu2 %vm274_vm2, %v509_v55 }
 0x1d5   :  { %1776 = vmatmul.msk.f32.gmra.mxu3 %vm274_vm2, %v509_v55 }
 0x1dc   :  { %1773 = vmatmul.msk.f32.gmra.mxu2 %vm274_vm2, %v510_v61 }
 0x1dd   :  { %1777 = vmatmul.msk.f32.gmra.mxu3 %vm274_vm2, %v510_v61 }
 0x1e4   :  { %1784 = vmatmul.msk.f32.vlgmr.msra.gmra.mxu2 %vm274_vm2, %v507_v56 }
 0x1ec   :  { %1785 = vmatmul.msk.f32.gmra.mxu2 %vm274_vm2, %v508_v62 }
 0x1f4   :  { %1786 = vmatmul.msk.f32.gmra.mxu2 %vm274_vm2, %v509_v55 }
 0x1fc   :  { %1787 = vmatmul.msk.f32.gmra.mxu2 %vm274_vm2, %v510_v61 }
 0x21d   :  { %v2413_v35 = vpop.permute.xlu2 %1184 }
 0x225   :  { %v2417_v36 = vpop.permute.xlu2 %1186 }
 0x235   :  { %v2385_v27 = vpop.permute.xlu1 %784 }
 0x236   :  { %v2373_v22 = vpop.permute.xlu0 %780 }
 0x23d   :  { %v2398_v30 = vpop.permute.xlu1 %786 }
 0x23e   :  { %v2379_v25 = vpop.permute.xlu0 %782 }
 0x245   :  { %v2425_v38 = vpop.permute.xlu1 %1190 }
 0x246   :  { %v2421_v37 = vpop.permute.xlu0 %1188 }
 0x247   :  { %v544_v42 = vpop.f32.mrf.mxu2 }
 0x248   :  { %v580_v60 = vpop.f32.mrf.mxu3 }
 0x24f   :  { %v547_v63 = vpop.f32.mrf.mxu2 }
 0x250   :  { %v583_v0 = vpop.f32.mrf.mxu3 }
 0x257   :  { %v550_v1 = vpop.f32.mrf.mxu2 }
 0x258   :  { %v586_v2 = vpop.f32.mrf.mxu3 }
 0x25f   :  { %v553_v3 = vpop.f32.mrf.mxu2 }
 0x260   :  { %v589_v4 = vpop.f32.mrf.mxu3  ;;  %642 = vmatpush.msra.mxu1 %v553_v3 }
 0x261   :  { %613 = vmatpush.msrb.mxu0 %v589_v4 }
 0x262   :  { %643 = vmatpush.msra.mxu1 %v550_v1 }
 0x263   :  { %614 = vmatpush.msrb.mxu0 %v586_v2  ;;  %v924_v2 = vld [vmem:[#allocation10 + $0x48] sm:$0xff] }
 0x264   :  { %644 = vmatpush.msra.mxu1 %v547_v63 }
 0x265   :  { %615 = vmatpush.msrb.mxu0 %v583_v0 }
 0x266   :  { %645 = vmatpush.msra.mxu1 %v544_v42  ;;  %v925_v42 = vld [vmem:[#allocation10 + $0x50] sm:$0xff] }
 0x267   :  { %616 = vmatpush.msrb.mxu0 %v580_v60  ;;  %1782 = vmatmul.msk.f32.vlgmr.msra.gmra.mxu1 %vm274_vm2, %v556_v5  ;;  %v675_v9 = vpop.f32.mrf.mxu2 }
 0x268   :  { %1780 = vmatmul.msk.f32.vlgmr.msrb.gmra.mxu0 %vm274_vm2, %v1778_v6  ;;  %844 = vmatpush.msrb.mxu1 %v831_v7  ;;  %v923_v6 = vld [vmem:[#allocation10 + $0x40] sm:$0xff]  ;;  %v863_v7 = vld [vmem:[#allocation8 + $0x18] sm:$0x3] }
 0x269   :  { %808 = vmatpush.msra.mxu0 %v779_v8 }
 0x26a   :  { %845 = vmatpush.msrb.mxu1 %v830_v10  ;;  %v826_v10 = vld [vmem:[#allocation8 + $0x8] sm:$0x3] }
 0x26b   :  { %809 = vmatpush.msra.mxu0 %v778_v11 }
 0x26c   :  { %846 = vmatpush.msrb.mxu1 %v829_v12 }
 0x26d   :  { %810 = vmatpush.msra.mxu0 %v777_v13 }
 0x26e   :  { %847 = vmatpush.msrb.mxu1 %v828_v14 }
 0x26f   :  { %1783 = vmatmul.msk.f32.gmra.mxu1 %vm274_vm2, %v557_v15  ;;  %v678_v18 = vpop.f32.mrf.mxu2  ;;  %811 = vmatpush.msra.mxu0 %v776_v16  ;;  %v1183_v16 = vld [vmem:[#allocation13 + $0x18] sm:$0xff] }
 0x270   :  { %1781 = vmatmul.msk.f32.gmra.mxu0 %vm274_vm2, %v1779_v17  ;;  %1007 = vmatpush.msra.mxu1 %v994_v19  ;;  %v1182_v19 = vld [vmem:[#allocation13 + $0x10] sm:$0xff] }
 0x272   :  { %1008 = vmatpush.msra.mxu1 %v993_v20 }
 0x274   :  { %1009 = vmatpush.msra.mxu1 %v992_v21 }
 0x276   :  { %1010 = vmatpush.msra.mxu1 %v991_v23  ;;  %v1181_v23 = vld [vmem:[#allocation13 + $0x8] sm:$0xff] }
 0x277   :  { %v681_v24 = vpop.f32.mrf.mxu2  ;;  %1796 = vmatmul.msk.f32.vlgmr.msrb.gmra.mxu1 %vm274_vm2, %v2373_v22 }
 0x278   :  { %1792 = vmatmul.msk.f32.vlgmr.msra.gmra.mxu0 %vm274_vm2, %v2373_v22  ;;  %1248 = vmatpush.msrb.mxu1 %v1235_v31 }
 0x27a   :  { %1249 = vmatpush.msrb.mxu1 %v1234_v32 }
 0x27c   :  { %1250 = vmatpush.msrb.mxu1 %v1233_v33 }
 0x27e   :  { %1251 = vmatpush.msrb.mxu1 %v1232_v34 }
 0x27f   :  { %v684_v26 = vpop.f32.mrf.mxu2  ;;  %1797 = vmatmul.msk.f32.gmra.mxu1 %vm274_vm2, %v2379_v25 }
 0x280   :  { %1793 = vmatmul.msk.f32.gmra.mxu0 %vm274_vm2, %v2379_v25  ;;  %708 = vmatpush.msra.mxu3 %v684_v26 }
 0x282   :  { %709 = vmatpush.msra.mxu3 %v681_v24 }
 0x284   :  { %710 = vmatpush.msra.mxu3 %v678_v18 }
 0x286   :  { %711 = vmatpush.msra.mxu3 %v675_v9 }
 0x287   :  { %1790 = vmatmul.msk.f32.vlgmr.msra.gmra.mxu3 %vm274_vm2, %v1788_v28  ;;  %1798 = vmatmul.msk.f32.gmra.mxu1 %vm274_vm2, %v2385_v27 }
 0x288   :  { %1794 = vmatmul.msk.f32.gmra.mxu0 %vm274_vm2, %v2385_v27 }
 0x28f   :  { %1791 = vmatmul.msk.f32.gmra.mxu3 %vm274_vm2, %v1789_v29  ;;  %1799 = vmatmul.msk.f32.gmra.mxu1 %vm274_vm2, %v2398_v30  ;;  %v1180_v29 = vld [vmem:[#allocation13] sm:$0xff] }
 0x290   :  { %1795 = vmatmul.msk.f32.gmra.mxu0 %vm274_vm2, %v2398_v30 }
 0x297   :  { %1810 = vmatmul.msk.f32.vlgmr.msra.gmra.mxu1 %vm274_vm2, %v2373_v22 }
 0x29f   :  { %1811 = vmatmul.msk.f32.gmra.mxu1 %vm274_vm2, %v2379_v25 }
 0x2a7   :  { %1812 = vmatmul.msk.f32.gmra.mxu1 %vm274_vm2, %v2385_v27 }
 0x2af   :  { %1813 = vmatmul.msk.f32.gmra.mxu1 %vm274_vm2, %v2398_v30 }
 0x2b7   :  { %1826 = vmatmul.msk.f32.vlgmr.msrb.gmra.mxu1 %vm274_vm2, %v2413_v35 }
 0x2bf   :  { %1827 = vmatmul.msk.f32.gmra.mxu1 %vm274_vm2, %v2417_v36 }
 0x2c7   :  { %1828 = vmatmul.msk.f32.gmra.mxu1 %vm274_vm2, %v2421_v37 }
 0x2cf   :  { %1829 = vmatmul.msk.f32.gmra.mxu1 %vm274_vm2, %v2425_v38 }
 0x2e4   :  { %v647_v39 = vpop.f32.mrf.mxu1 }
 0x2e5   :  { %v618_v40 = vpop.f32.mrf.mxu0 }
 0x2e6   :  { %v648_v55 = vadd.f32 %v647_v39, %v618_v40 }
 0x2ec   :  { %v650_v41 = vpop.f32.mrf.mxu1 }
 0x2ed   :  { %v621_v43 = vpop.f32.mrf.mxu0 }
 0x2ee   :  { %v651_v56 = vadd.f32 %v650_v41, %v621_v43 }
 0x2f4   :  { %v849_v46 = vpop.f32.mrf.mxu1 }
 0x2f5   :  { %v813_v47 = vpop.f32.mrf.mxu0 }
 0x2fc   :  { %v852_v48 = vpop.f32.mrf.mxu1 }
 0x2fd   :  { %v816_v49 = vpop.f32.mrf.mxu0 }
 0x304   :  { %v855_v50 = vpop.f32.mrf.mxu1 }
 0x305   :  { %v819_v51 = vpop.f32.mrf.mxu0 }
 0x30a   :  { %v713_v52 = vpop.f32.mrf.mxu3 }
 0x30b   :  { %v2429_v58 = vadd.f32 %v713_v52, %v648_v55 }
 0x30c   :  { %v858_v53 = vpop.f32.mrf.mxu1 }
 0x30d   :  { %v822_v54 = vpop.f32.mrf.mxu0  ;;  %882 = vmatpush.msrb.mxu3 %v858_v53  ;;  %v733_v0 = vmul.f32 %v2429_v58, %v2429_v58  ;;  %v722_v53 = vld [vmem:[%s2582_s8] sm:$0x1] }
 0x30e   :  { %911 = vmatpush.msrb.mxu2 %v822_v54 }
 0x30f   :  { %883 = vmatpush.msrb.mxu3 %v855_v50 }
 0x310   :  { %912 = vmatpush.msrb.mxu2 %v819_v51 }
 0x311   :  { %884 = vmatpush.msrb.mxu3 %v852_v48 }
 0x312   :  { %913 = vmatpush.msrb.mxu2 %v816_v49  ;;  %v716_v45 = vpop.f32.mrf.mxu3  ;;  %v721_v49 = vld [vmem:[%s2581_s7] sm:$0x1] }
 0x313   :  { %v2431_v61 = vadd.f32 %v716_v45, %v651_v56  ;;  %885 = vmatpush.msrb.mxu3 %v849_v46 }
 0x314   :  { %914 = vmatpush.msrb.mxu2 %v813_v47  ;;  %1800 = vmatmul.msk.f32.vlgmr.msrb.gmra.mxu3 %vm274_vm2, %v862_v57  ;;  %v1012_v62 = vpop.f32.mrf.mxu1 }
 0x315   :  { %v724_v60 = vsel %vm723_vm7, %v2431_v61, 0.0  ;;  %v734_v63 = vmul.f32 %v2431_v61, %v2431_v61  ;;  %1802 = vmatmul.msk.f32.vlgmr.msrb.gmra.mxu2 %vm274_vm2, %v825_v44  ;;  %939 = vmatpush.msra.mxu3 %v926_v59 }
 0x316   :  { %v725_v1 = vadd.f32 %v724_v60, %v2429_v58 }
 0x317   :  { %v735_v3 = vsel %vm723_vm7, %v734_v63, 0.0  ;;  %940 = vmatpush.msra.mxu3 %v925_v42 }
 0x318   :  { %v726_v4 = vrot.slane %v725_v1, 4  ;;  %v736_v5 = vadd.f32 %v735_v3, %v733_v0 }
 0x319   :  { %941 = vmatpush.msra.mxu3 %v924_v2 }
 0x31a   :  { %v727_v8 = vadd.f32 %v726_v4, %v725_v1  ;;  %v737_v9 = vrot.slane %v736_v5, 4  ;;  %v1026_v1 = vld [vmem:[#allocation8 + $0x38] sm:$0x3] }
 0x31b   :  { %942 = vmatpush.msra.mxu3 %v923_v6  ;;  %v1062_v6 = vld [vmem:[#allocation10 + $0x98] sm:$0xff] }
 0x31c   :  { %v728_v11 = vrot.slane %v727_v8, 2  ;;  %v738_v12 = vadd.f32 %v737_v9, %v736_v5  ;;  %1801 = vmatmul.msk.f32.gmra.mxu3 %vm274_vm2, %v863_v7  ;;  %v1015_v13 = vpop.f32.mrf.mxu1  ;;  %v957_v5 = vld [vmem:[#allocation8 + $0x20] sm:$0xff]  ;;  %v1060_v9 = vld [vmem:[#allocation10 + $0x88] sm:$0xff] }
 0x31d   :  { %1803 = vmatmul.msk.f32.gmra.mxu2 %vm274_vm2, %v826_v10  ;;  %1212 = vmatpush.msrb.mxu3 %v1183_v16  ;;  %v1059_v10 = vld [vmem:[#allocation10 + $0x80] sm:$0xff] }
 0x31e   :  { %v729_v14 = vadd.f32 %v728_v11, %v727_v8  ;;  %v739_v15 = vrot.slane %v738_v12, 2  ;;  %v1061_v8 = vld [vmem:[#allocation10 + $0x90] sm:$0xff]  ;;  %v958_v11 = vld [vmem:[#allocation8 + $0x28] sm:$0x3]  ;;  %v1397_v16 = vld [vmem:[#allocation13 + $0x70] sm:$0xff] }
 0x31f   :  { %1213 = vmatpush.msrb.mxu3 %v1182_v19 }
 0x320   :  { %v730_v17 = vrot.slane %v729_v14, 1  ;;  %v740_v18 = vadd.f32 %v739_v15, %v738_v12  ;;  %v1398_v15 = vld [vmem:[#allocation13 + $0x78] sm:$0xff] }
 0x321   :  { %1214 = vmatpush.msrb.mxu3 %v1181_v23 }
 0x322   :  { %v731_v20 = vadd.f32 %v730_v17, %v729_v14  ;;  %v741_v21 = vrot.slane %v740_v18, 1  ;;  %v1396_v17 = vld [vmem:[#allocation13 + $0x68] sm:$0xff] }
 0x323   :  { %1215 = vmatpush.msrb.mxu3 %v1180_v29 }
 0x324   :  { %v732_v24 = vmul.f32 0.1, %v731_v20  ;;  %v742_v26 = vadd.f32 %v741_v21, %v740_v18  ;;  %1804 = vmatmul.msk.f32.vlgmr.msra.gmra.mxu3 %vm274_vm2, %v2373_v22  ;;  %v1018_v28 = vpop.f32.mrf.mxu1  ;;  %v1395_v18 = vld [vmem:[#allocation13 + $0x60] sm:$0xff] }
 0x326   :  { %v743_v31 = vmul.f32 0.1, %v742_v26  ;;  %v744_v32 = vmul.f32 %v732_v24, %v732_v24 }
 0x328   :  { %v745_v33 = vsub.f32 %v743_v31, %v744_v32 }
 0x32a   :  { %v746_v34 = vmax.f32 %v745_v33, 0.0 }
 0x32c   :  { %v747_v39 = vadd.f32 1e-05, %v746_v34  ;;  %1805 = vmatmul.msk.f32.gmra.mxu3 %vm274_vm2, %v2379_v25  ;;  %v1021_v40 = vpop.f32.mrf.mxu1 }
 0x32d   :  { %1045 = vmatpush.msra.mxu2 %v1021_v40  ;;  %v1093_v40 = vld [vmem:[#allocation8 + $0x40] sm:$0xff] }
 0x32e   :  { %1881 = vrsqrt.f32 %v747_v39  ;;  %vm754_vm9 = vweird.f32 %v747_v39 }
 0x32f   :  { %1046 = vmatpush.msra.mxu2 %v1018_v28 }
 0x331   :  { %1047 = vmatpush.msra.mxu2 %v1015_v13 }
 0x333   :  { %1048 = vmatpush.msra.mxu2 %v1012_v62 }
 0x334   :  { %v1882_v41 = vpop.eup %1881  ;;  %1806 = vmatmul.msk.f32.gmra.mxu3 %vm274_vm2, %v2385_v27  ;;  %v1253_v29 = vpop.f32.mrf.mxu1 }
 0x335   :  { %v749_v43 = vmul.f32 %v1882_v41, %v747_v39  ;;  %vm755_vm8 = vweird.f32 %v1882_v41 }
 0x336   :  { %vm756_vm10 = vmor %vm754_vm9, %vm755_vm8 }
 0x337   :  { %v750_v46 = vmul.f32 %v1882_v41, %v749_v43 }
 0x339   :  { %v751_v47 = vmul.f32 0.5, %v750_v46  ;;  %v1094_v46 = vld [vmem:[#allocation8 + $0x48] sm:$0x3] }
 0x33b   :  { %v752_v48 = vsub.f32 1.5, %v751_v47  ;;  %v1330_v47 = vld [vmem:[#allocation13 + $0x58] sm:$0xff] }
 0x33c   :  { %1807 = vmatmul.msk.f32.gmra.mxu3 %vm274_vm2, %v2398_v30  ;;  %v1256_v32 = vpop.f32.mrf.mxu1 }
 0x33d   :  { %v753_v50 = vmul.f32 %v1882_v41, %v752_v48 }
 0x33f   :  { %v757_v51 = vsel %vm756_vm10, %v1882_v41, %v753_v50  ;;  %v1328_v50 = vld [vmem:[#allocation13 + $0x48] sm:$0xff] }
 0x340   :  { %v758_v52 = vmul.f32 %v757_v51, %v721_v49  ;;  %v1329_v49 = vld [vmem:[#allocation13 + $0x50] sm:$0xff]  ;;  %v1327_v51 = vld [vmem:[#allocation13 + $0x40] sm:$0xff] }
 0x342   :  { %v759_v54 = vmul.f32 %v758_v52, %v732_v24  ;;  %v762_v55 = vperm.slane %v758_v52, 0  ;;  %v1266_v52 = vld [vmem:[#allocation11 + $0x10] sm:$0xff] }
 0x344   :  { %v760_v56 = vsub.f32 %v722_v53, %v759_v54  ;;  %1822 = vmatmul.msk.f32.vlgmr.msrb.gmra.mxu3 %vm274_vm2, %v2413_v35  ;;  %v764_v57 = vmul.f32 %v762_v55, %v2429_v58  ;;  %v765_v45 = vmul.f32 %v762_v55, %v2431_v61  ;;  %v1025_v61 = vld [vmem:[#allocation8 + $0x30] sm:$0xff]  ;;  %v1259_v34 = vpop.f32.mrf.mxu1  ;;  %v1267_v54 = vld [vmem:[#allocation11 + $0x18] sm:$0xf] }
 0x345   :  { %1814 = vmatmul.msk.f32.vlgmr.msra.gmra.mxu2 %vm274_vm2, %v1025_v61 }
 0x346   :  { %v767_v44 = vperm.slane %v760_v56, 0  ;;  %v1534_v56 = vld [vmem:[#allocation13 + $0xb8] sm:$0xff] }
 0x348   :  { %v769_v59 = vadd.f32 %v767_v44, %v764_v57  ;;  %v770_v62 = vadd.f32 %v767_v44, %v765_v45  ;;  %v1533_v57 = vld [vmem:[#allocation13 + $0xb0] sm:$0xff]  ;;  %v1532_v45 = vld [vmem:[#allocation13 + $0xa8] sm:$0xff]  ;;  %v1531_v44 = vld [vmem:[#allocation13 + $0xa0] sm:$0xff] }
 0x34a   :  { %v771_v42 = vmax.f32 %v769_v59, 0.0  ;;  %v772_v60 = vmax.f32 %v770_v62, 0.0 }
 0x34c   :  { %773 = vst [vmem:[#allocation16] sm:$0x1f] %v771_v42  ;;  %1823 = vmatmul.msk.f32.gmra.mxu3 %vm274_vm2, %v2417_v36  ;;  %v1262_v41 = vpop.f32.mrf.mxu1 }
 0x34d   :  { %774 = vst [vmem:[#allocation16 + $0xb] sm:$0xe0] %v771_v42  ;;  %1815 = vmatmul.msk.f32.gmra.mxu2 %vm274_vm2, %v1026_v1 }
 0x34e   :  { %775 = vst [vmem:[#allocation16 + $0x13] sm:$0x3] %v772_v60 }
 0x354   :  { %1824 = vmatmul.msk.f32.gmra.mxu3 %vm274_vm2, %v2421_v37 }
 0x35c   :  { %1825 = vmatmul.msk.f32.gmra.mxu3 %vm274_vm2, %v2425_v38 }
 0x397   :  { %v887_v58 = vpop.f32.mrf.mxu3 }
 0x39f   :  { %v890_v63 = vpop.f32.mrf.mxu3 }
 0x3a7   :  { %v944_v0 = vpop.f32.mrf.mxu3 }
 0x3af   :  { %v947_v2 = vpop.f32.mrf.mxu3 }
 0x3b7   :  { %v950_v3 = vpop.f32.mrf.mxu3 }
 0x3bf   :  { %v953_v4 = vpop.f32.mrf.mxu3 }
 0x3c0   :  { %977 = vmatpush.msrb.mxu0 %v953_v4 }
 0x3c2   :  { %978 = vmatpush.msrb.mxu0 %v950_v3 }
 0x3c4   :  { %979 = vmatpush.msrb.mxu0 %v947_v2 }
 0x3c6   :  { %980 = vmatpush.msrb.mxu0 %v944_v0 }
 0x3c7   :  { %1808 = vmatmul.msk.f32.vlgmr.msrb.gmra.mxu0 %vm274_vm2, %v957_v5  ;;  %v1217_v7 = vpop.f32.mrf.mxu3 }
 0x3c8   :  { %1075 = vmatpush.msra.mxu0 %v1062_v6 }
 0x3ca   :  { %1076 = vmatpush.msra.mxu0 %v1061_v8 }
 0x3cc   :  { %1077 = vmatpush.msra.mxu0 %v1060_v9 }
 0x3ce   :  { %1078 = vmatpush.msra.mxu0 %v1059_v10 }
 0x3cf   :  { %1809 = vmatmul.msk.f32.gmra.mxu0 %vm274_vm2, %v958_v11  ;;  %v1220_v12 = vpop.f32.mrf.mxu3 }
 0x3d7   :  { %1816 = vmatmul.msk.f32.vlgmr.msra.gmra.mxu0 %vm274_vm2, %v2373_v22  ;;  %v1223_v13 = vpop.f32.mrf.mxu3  ;;  %v1229_v22 = vld [vmem:[#allocation11] sm:$0xff] }
 0x3df   :  { %1817 = vmatmul.msk.f32.gmra.mxu0 %vm274_vm2, %v2379_v25  ;;  %v1226_v14 = vpop.f32.mrf.mxu3  ;;  %v1230_v25 = vld [vmem:[#allocation11 + $0x8] sm:$0xf] }
 0x3e0   :  { %1315 = vmatpush.msrb.mxu0 %v1226_v14 }
 0x3e2   :  { %1316 = vmatpush.msrb.mxu0 %v1223_v13 }
 0x3e4   :  { %1317 = vmatpush.msrb.mxu0 %v1220_v12 }
 0x3e6   :  { %1318 = vmatpush.msrb.mxu0 %v1217_v7 }
 0x3e7   :  { %1818 = vmatmul.msk.f32.gmra.mxu0 %vm274_vm2, %v2385_v27  ;;  %v916_v27 = vpop.f32.mrf.mxu2 }
 0x3e8   :  { %1411 = vmatpush.msra.mxu0 %v1398_v15 }
 0x3ea   :  { %1412 = vmatpush.msra.mxu0 %v1397_v16 }
 0x3ec   :  { %1413 = vmatpush.msra.mxu0 %v1396_v17 }
 0x3ee   :  { %1414 = vmatpush.msra.mxu0 %v1395_v18 }
 0x3ef   :  { %1819 = vmatmul.msk.f32.gmra.mxu0 %vm274_vm2, %v2398_v30  ;;  %v917_v30 = vadd.f32 %v916_v27, %v887_v58  ;;  %v919_v21 = vpop.f32.mrf.mxu2 }
 0x3f0   :  { %v920_v23 = vadd.f32 %v919_v21, %v890_v63 }
 0x3f7   :  { %1832 = vmatmul.msk.f32.vlgmr.msrb.gmra.mxu0 %vm274_vm2, %v1229_v22  ;;  %v1050_v42 = vpop.f32.mrf.mxu2 }
 0x3ff   :  { %1833 = vmatmul.msk.f32.gmra.mxu0 %vm274_vm2, %v1230_v25  ;;  %v1053_v60 = vpop.f32.mrf.mxu2 }
 0x407   :  { %1840 = vmatmul.msk.f32.vlgmr.msra.gmra.mxu0 %vm274_vm2, %v2413_v35 }
 0x40f   :  { %1841 = vmatmul.msk.f32.gmra.mxu0 %vm274_vm2, %v2417_v36 }
 0x417   :  { %1842 = vmatmul.msk.f32.gmra.mxu0 %vm274_vm2, %v2421_v37 }
 0x41f   :  { %1843 = vmatmul.msk.f32.gmra.mxu0 %vm274_vm2, %v2425_v38 }
 0x444   :  { %v982_v19 = vpop.f32.mrf.mxu0 }
 0x445   :  { %v2491_v20 = vadd.f32 %v982_v19, %v917_v30 }
 0x447   :  { %v1056_v63 = vadd.f32 %v1050_v42, %v2491_v20 }
 0x44c   :  { %v985_v24 = vpop.f32.mrf.mxu0 }
 0x44d   :  { %v2493_v26 = vadd.f32 %v985_v24, %v920_v23 }
 0x44f   :  { %v1057_v61 = vadd.f32 %v1053_v60, %v2493_v26  ;;  %v1466_v60 = vld [vmem:[#allocation13 + $0x98] sm:$0xff] }
 0x454   :  { %v1080_v28 = vpop.f32.mrf.mxu0 }
 0x45c   :  { %v1083_v31 = vpop.f32.mrf.mxu0 }
 0x464   :  { %v1086_v33 = vpop.f32.mrf.mxu0 }
 0x46c   :  { %v1089_v39 = vpop.f32.mrf.mxu0 }
 0x46d   :  { %1113 = vmatpush.msrb.mxu2 %v1089_v39  ;;  %v1430_v39 = vld [vmem:[#allocation11 + $0x38] sm:$0xf] }
 0x46f   :  { %1114 = vmatpush.msrb.mxu2 %v1086_v33 }
 0x471   :  { %1115 = vmatpush.msrb.mxu2 %v1083_v31  ;;  %v1429_v31 = vld [vmem:[#allocation11 + $0x30] sm:$0xff] }
 0x473   :  { %1116 = vmatpush.msrb.mxu2 %v1080_v28 }
 0x474   :  { %1820 = vmatmul.msk.f32.vlgmr.msrb.gmra.mxu2 %vm274_vm2, %v1093_v40  ;;  %v2496_v43 = vpop.f32.mrf.mxu0 }
 0x475   :  { %1286 = vmatpush.msra.mxu2 %v1262_v41 }
 0x477   :  { %1287 = vmatpush.msra.mxu2 %v1259_v34 }
 0x479   :  { %1288 = vmatpush.msra.mxu2 %v1256_v32 }
 0x47b   :  { %1289 = vmatpush.msra.mxu2 %v1253_v29 }
 0x47c   :  { %1821 = vmatmul.msk.f32.gmra.mxu2 %vm274_vm2, %v1094_v46  ;;  %v2499_v48 = vpop.f32.mrf.mxu0 }
 0x47d   :  { %1343 = vmatpush.msrb.mxu2 %v1330_v47  ;;  %v1126_v47 = vld [vmem:[%s2585_s11] sm:$0x1] }
 0x47f   :  { %1344 = vmatpush.msrb.mxu2 %v1329_v49 }
 0x481   :  { %1345 = vmatpush.msrb.mxu2 %v1328_v50 }
 0x483   :  { %1346 = vmatpush.msrb.mxu2 %v1327_v51 }
 0x484   :  { %1830 = vmatmul.msk.f32.vlgmr.msra.gmra.mxu2 %vm274_vm2, %v1266_v52  ;;  %v1416_v53 = vpop.f32.mrf.mxu0  ;;  %v1127_v52 = vld [vmem:[%s2586_s12] sm:$0x1] }
 0x485   :  { %1547 = vmatpush.msra.mxu2 %v1534_v56 }
 0x487   :  { %1548 = vmatpush.msra.mxu2 %v1533_v57 }
 0x489   :  { %1549 = vmatpush.msra.mxu2 %v1532_v45 }
 0x48b   :  { %1550 = vmatpush.msra.mxu2 %v1531_v44 }
 0x48c   :  { %1831 = vmatmul.msk.f32.gmra.mxu2 %vm274_vm2, %v1267_v54  ;;  %v1419_v55 = vpop.f32.mrf.mxu0 }
 0x494   :  { %1834 = vmatmul.msk.f32.vlgmr.msrb.gmra.mxu2 %vm274_vm2, %v2413_v35  ;;  %v1422_v59 = vpop.f32.mrf.mxu0 }
 0x49c   :  { %1835 = vmatmul.msk.f32.gmra.mxu2 %vm274_vm2, %v2417_v36  ;;  %v1425_v62 = vpop.f32.mrf.mxu0 }
 0x49d   :  { %1449 = vmatpush.msra.mxu1 %v1425_v62 }
 0x49f   :  { %1450 = vmatpush.msra.mxu1 %v1422_v59  ;;  %v1361_v59 = vld [vmem:[#allocation11 + $0x20] sm:$0xff] }
 0x4a1   :  { %1451 = vmatpush.msra.mxu1 %v1419_v55 }
 0x4a3   :  { %1452 = vmatpush.msra.mxu1 %v1416_v53 }
 0x4a4   :  { %1836 = vmatmul.msk.f32.gmra.mxu2 %vm274_vm2, %v2421_v37  ;;  %1844 = vmatmul.msk.f32.vlgmr.msra.gmra.mxu1 %vm274_vm2, %v1429_v31 }
 0x4ac   :  { %1837 = vmatmul.msk.f32.gmra.mxu2 %vm274_vm2, %v2425_v38  ;;  %1845 = vmatmul.msk.f32.gmra.mxu1 %vm274_vm2, %v1430_v39 }
 0x4b4   :  { %1852 = vmatmul.msk.f32.vlgmr.msra.gmra.mxu2 %vm274_vm2, %v2413_v35 }
 0x4bc   :  { %1853 = vmatmul.msk.f32.gmra.mxu2 %vm274_vm2, %v2417_v36 }
 0x4c4   :  { %1854 = vmatmul.msk.f32.gmra.mxu2 %vm274_vm2, %v2421_v37 }
 0x4cc   :  { %1855 = vmatmul.msk.f32.gmra.mxu2 %vm274_vm2, %v2425_v38 }
 0x4f7   :  { %v1118_v58 = vpop.f32.mrf.mxu2 }
 0x4f8   :  { %v1124_v0 = vadd.f32 %v1118_v58, %v1056_v63 }
 0x4fa   :  { %v1137_v5 = vmul.f32 %v1124_v0, %v1124_v0 }
 0x4ff   :  { %v1121_v1 = vpop.f32.mrf.mxu2 }
 0x500   :  { %v1125_v2 = vadd.f32 %v1121_v1, %v1057_v61  ;;  %v1465_v1 = vld [vmem:[#allocation13 + $0x90] sm:$0xff] }
 0x502   :  { %v1128_v3 = vsel %vm723_vm7, %v1125_v2, 0.0  ;;  %v1138_v4 = vmul.f32 %v1125_v2, %v1125_v2 }
 0x503   :  { %v1129_v6 = vadd.f32 %v1128_v3, %v1124_v0  ;;  %v1464_v3 = vld [vmem:[#allocation13 + $0x88] sm:$0xff] }
 0x504   :  { %v1139_v7 = vsel %vm723_vm7, %v1138_v4, 0.0 }
 0x505   :  { %v1130_v8 = vrot.slane %v1129_v6, 4  ;;  %v1140_v9 = vadd.f32 %v1139_v7, %v1137_v5 }
 0x507   :  { %v1131_v10 = vadd.f32 %v1130_v8, %v1129_v6  ;;  %v1141_v11 = vrot.slane %v1140_v9, 4  ;;  %v2523_v12 = vpop.f32.mrf.mxu2 }
 0x508   :  { %v1321_v7 = vadd.f32 %v2496_v43, %v2523_v12  ;;  %v1497_v43 = vld [vmem:[#allocation11 + $0x40] sm:$0xff]  ;;  %v1602_v12 = vld [vmem:[#allocation13 + $0xd8] sm:$0xff] }
 0x509   :  { %v1132_v13 = vrot.slane %v1131_v10, 2  ;;  %v1142_v14 = vadd.f32 %v1141_v11, %v1140_v9 }
 0x50b   :  { %v1133_v15 = vadd.f32 %v1132_v13, %v1131_v10  ;;  %v1143_v16 = vrot.slane %v1142_v14, 2 }
 0x50d   :  { %v1134_v17 = vrot.slane %v1133_v15, 1  ;;  %v1144_v18 = vadd.f32 %v1143_v16, %v1142_v14 }
 0x50f   :  { %v1135_v22 = vadd.f32 %v1134_v17, %v1133_v15  ;;  %v1145_v25 = vrot.slane %v1144_v18, 1  ;;  %v2525_v27 = vpop.f32.mrf.mxu2  ;;  %v1565_v17 = vld [vmem:[#allocation11 + $0x50] sm:$0xff] }
 0x510   :  { %v1324_v13 = vadd.f32 %v2499_v48, %v2525_v27  ;;  %v1601_v48 = vld [vmem:[#allocation13 + $0xd0] sm:$0xff]  ;;  %v1600_v27 = vld [vmem:[#allocation13 + $0xc8] sm:$0xff] }
 0x511   :  { %v1136_v30 = vmul.f32 0.1, %v1135_v22  ;;  %v1146_v19 = vadd.f32 %v1145_v25, %v1144_v18  ;;  %v1566_v22 = vld [vmem:[#allocation11 + $0x58] sm:$0xf] }
 0x513   :  { %v1147_v20 = vmul.f32 0.1, %v1146_v19  ;;  %v1148_v21 = vmul.f32 %v1136_v30, %v1136_v30  ;;  %v1599_v19 = vld [vmem:[#allocation13 + $0xc0] sm:$0xff] }
 0x515   :  { %v1149_v23 = vsub.f32 %v1147_v20, %v1148_v21  ;;  %v1498_v20 = vld [vmem:[#allocation11 + $0x48] sm:$0xf] }
 0x517   :  { %v1150_v24 = vmax.f32 %v1149_v23, 0.0  ;;  %v1348_v26 = vpop.f32.mrf.mxu2 }
 0x519   :  { %v1151_v28 = vadd.f32 1e-05, %v1150_v24 }
 0x51b   :  { %1883 = vrsqrt.f32 %v1151_v28  ;;  %vm1158_vm12 = vweird.f32 %v1151_v28 }
 0x51f   :  { %v1351_v29 = vpop.f32.mrf.mxu2 }
 0x521   :  { %v1884_v32 = vpop.eup %1883  ;;  %v1454_v9 = vpop.f32.mrf.mxu1 }
 0x522   :  { %v1153_v33 = vmul.f32 %v1884_v32, %v1151_v28  ;;  %vm1159_vm11 = vweird.f32 %v1884_v32 }
 0x523   :  { %vm1160_vm13 = vmor %vm1158_vm12, %vm1159_vm11 }
 0x524   :  { %v1154_v34 = vmul.f32 %v1884_v32, %v1153_v33 }
 0x526   :  { %v1155_v40 = vmul.f32 0.5, %v1154_v34 }
 0x527   :  { %v1354_v41 = vpop.f32.mrf.mxu2 }
 0x528   :  { %v1156_v46 = vsub.f32 1.5, %v1155_v40 }
 0x529   :  { %v1457_v21 = vpop.f32.mrf.mxu1 }
 0x52a   :  { %v1157_v49 = vmul.f32 %v1884_v32, %v1156_v46 }
 0x52c   :  { %v1161_v50 = vsel %vm1160_vm13, %v1884_v32, %v1157_v49 }
 0x52d   :  { %v1162_v51 = vmul.f32 %v1161_v50, %v1126_v47 }
 0x52f   :  { %v1163_v53 = vmul.f32 %v1162_v51, %v1136_v30  ;;  %v1166_v54 = vperm.slane %v1162_v51, 0  ;;  %v1357_v55 = vpop.f32.mrf.mxu2 }
 0x530   :  { %1381 = vmatpush.msra.mxu3 %v1357_v55 }
 0x531   :  { %v1164_v56 = vsub.f32 %v1127_v52, %v1163_v53  ;;  %v1168_v57 = vmul.f32 %v1166_v54, %v1124_v0  ;;  %v1169_v45 = vmul.f32 %v1166_v54, %v1125_v2  ;;  %v1463_v0 = vld [vmem:[#allocation13 + $0x80] sm:$0xff]  ;;  %v1362_v2 = vld [vmem:[#allocation11 + $0x28] sm:$0xf] }
 0x532   :  { %1382 = vmatpush.msra.mxu3 %v1354_v41 }
 0x533   :  { %v1171_v44 = vperm.slane %v1164_v56, 0 }
 0x534   :  { %1383 = vmatpush.msra.mxu3 %v1351_v29 }
 0x535   :  { %v1173_v62 = vadd.f32 %v1171_v44, %v1168_v57  ;;  %v1174_v42 = vadd.f32 %v1171_v44, %v1169_v45 }
 0x536   :  { %1384 = vmatpush.msra.mxu3 %v1348_v26 }
 0x537   :  { %v1175_v58 = vmax.f32 %v1173_v62, 0.0  ;;  %v1176_v63 = vmax.f32 %v1174_v42, 0.0  ;;  %1838 = vmatmul.msk.f32.vlgmr.msra.gmra.mxu3 %vm274_vm2, %v1361_v59  ;;  %v1552_v61 = vpop.f32.mrf.mxu2 }
 0x538   :  { %1479 = vmatpush.msrb.mxu3 %v1466_v60 }
 0x539   :  { %1177 = vst [vmem:[#allocation16 + $0x5] sm:$0x1f] %v1175_v58 }
 0x53a   :  { %1178 = vst [vmem:[#allocation16 + $0x10] sm:$0xe0] %v1175_v58  ;;  %1480 = vmatpush.msrb.mxu3 %v1465_v1 }
 0x53b   :  { %1179 = vst [vmem:[#allocation16 + $0x18] sm:$0x3] %v1176_v63 }
 0x53c   :  { %1481 = vmatpush.msrb.mxu3 %v1464_v3 }
 0x53e   :  { %1482 = vmatpush.msrb.mxu3 %v1463_v0 }
 0x53f   :  { %1839 = vmatmul.msk.f32.gmra.mxu3 %vm274_vm2, %v1362_v2  ;;  %v1555_v4 = vpop.f32.mrf.mxu2 }
 0x547   :  { %1846 = vmatmul.msk.f32.vlgmr.msrb.gmra.mxu3 %vm274_vm2, %v2413_v35  ;;  %v1558_v5 = vpop.f32.mrf.mxu2 }
 0x54f   :  { %1847 = vmatmul.msk.f32.gmra.mxu3 %vm274_vm2, %v2417_v36  ;;  %v1561_v6 = vpop.f32.mrf.mxu2 }
 0x550   :  { %1585 = vmatpush.msrb.mxu0 %v1561_v6 }
 0x552   :  { %1586 = vmatpush.msrb.mxu0 %v1558_v5 }
 0x554   :  { %1587 = vmatpush.msrb.mxu0 %v1555_v4 }
 0x556   :  { %1588 = vmatpush.msrb.mxu0 %v1552_v61 }
 0x557   :  { %1848 = vmatmul.msk.f32.gmra.mxu3 %vm274_vm2, %v2421_v37  ;;  %1856 = vmatmul.msk.f32.vlgmr.msrb.gmra.mxu0 %vm274_vm2, %v1565_v17  ;;  %v1667_v17 = vld [vmem:[#allocation14] sm:$0x1] }
 0x55f   :  { %1849 = vmatmul.msk.f32.gmra.mxu3 %vm274_vm2, %v2425_v38  ;;  %1857 = vmatmul.msk.f32.gmra.mxu0 %vm274_vm2, %v1566_v22 }
 0x5ba   :  { %v1386_v8 = vpop.f32.mrf.mxu3 }
 0x5bb   :  { %v1392_v10 = vadd.f32 %v1386_v8, %v1321_v7 }
 0x5bd   :  { %v1460_v11 = vadd.f32 %v1454_v9, %v1392_v10 }
 0x5c2   :  { %v1389_v14 = vpop.f32.mrf.mxu3 }
 0x5c3   :  { %v1393_v15 = vadd.f32 %v1389_v14, %v1324_v13  ;;  %v1666_v13 = vld [vmem:[%s2589_s15] sm:$0x1]  ;;  %s1726_s15 = sshll.u32 %s2591_s17, 4  ;;  %s1727_s15 = int_to_ptr.hbm [resolvable:$true] %s1726_s15 }
 0x5c5   :  { %v1461_v26 = vadd.f32 %v1457_v21, %v1393_v15 }
 0x5ca   :  { %v1484_v16 = vpop.f32.mrf.mxu3 }
 0x5d2   :  { %v1487_v18 = vpop.f32.mrf.mxu3 }
 0x5da   :  { %v1490_v25 = vpop.f32.mrf.mxu3 }
 0x5e2   :  { %v1493_v30 = vpop.f32.mrf.mxu3 }
 0x5e3   :  { %1517 = vmatpush.msrb.mxu1 %v1493_v30 }
 0x5e5   :  { %1518 = vmatpush.msrb.mxu1 %v1490_v25 }
 0x5e7   :  { %1519 = vmatpush.msrb.mxu1 %v1487_v18 }
 0x5e9   :  { %1520 = vmatpush.msrb.mxu1 %v1484_v16 }
 0x5ea   :  { %1850 = vmatmul.msk.f32.vlgmr.msrb.gmra.mxu1 %vm274_vm2, %v1497_v43 }
 0x5eb   :  { %1615 = vmatpush.msra.mxu1 %v1602_v12 }
 0x5ed   :  { %1616 = vmatpush.msra.mxu1 %v1601_v48 }
 0x5ef   :  { %1617 = vmatpush.msra.mxu1 %v1600_v27 }
 0x5f1   :  { %1618 = vmatpush.msra.mxu1 %v1599_v19 }
 0x5f2   :  { %1851 = vmatmul.msk.f32.gmra.mxu1 %vm274_vm2, %v1498_v20 }
 0x5fa   :  { %1858 = vmatmul.msk.f32.vlgmr.msra.gmra.mxu1 %vm274_vm2, %v2413_v35  ;;  %v1633_v35 = vld [vmem:[#allocation11 + $0x60] sm:$0xff] }
 0x602   :  { %1859 = vmatmul.msk.f32.gmra.mxu1 %vm274_vm2, %v2417_v36  ;;  %v1634_v36 = vld [vmem:[#allocation11 + $0x68] sm:$0xf] }
 0x60a   :  { %1860 = vmatmul.msk.f32.gmra.mxu1 %vm274_vm2, %v2421_v37  ;;  %v1590_v37 = vpop.f32.mrf.mxu0 }
 0x612   :  { %1861 = vmatmul.msk.f32.gmra.mxu1 %vm274_vm2, %v2425_v38  ;;  %v1593_v39 = vpop.f32.mrf.mxu0 }
 0x667   :  { %v1522_v23 = vpop.f32.mrf.mxu1 }
 0x668   :  { %v1528_v24 = vadd.f32 %v1522_v23, %v1460_v11 }
 0x66a   :  { %v1596_v40 = vadd.f32 %v1590_v37, %v1528_v24 }
 0x66f   :  { %v1525_v28 = vpop.f32.mrf.mxu1 }
 0x670   :  { %v1529_v29 = vadd.f32 %v1525_v28, %v1461_v26 }
 0x672   :  { %v1597_v41 = vadd.f32 %v1593_v39, %v1529_v29 }
 0x677   :  { %v1620_v31 = vpop.f32.mrf.mxu1 }
 0x67f   :  { %v1623_v32 = vpop.f32.mrf.mxu1 }
 0x687   :  { %v1626_v33 = vpop.f32.mrf.mxu1 }
 0x68f   :  { %v1629_v34 = vpop.f32.mrf.mxu1 }
 0x690   :  { %1653 = vmatpush.msra.mxu3 %v1629_v34 }
 0x692   :  { %1654 = vmatpush.msra.mxu3 %v1626_v33 }
 0x694   :  { %1655 = vmatpush.msra.mxu3 %v1623_v32 }
 0x696   :  { %1656 = vmatpush.msra.mxu3 %v1620_v31 }
 0x697   :  { %1862 = vmatmul.msk.f32.vlgmr.msra.gmra.mxu3 %vm274_vm2, %v1633_v35 }
 0x69f   :  { %1863 = vmatmul.msk.f32.gmra.mxu3 %vm274_vm2, %v1634_v36 }
 0x71a   :  { %v1658_v38 = vpop.f32.mrf.mxu3 }
 0x71b   :  { %v1664_v46 = vadd.f32 %v1658_v38, %v1596_v40 }
 0x71d   :  { %v1677_v52 = vmul.f32 %v1664_v46, %v1664_v46 }
 0x722   :  { %v1661_v47 = vpop.f32.mrf.mxu3 }
 0x723   :  { %v1665_v49 = vadd.f32 %v1661_v47, %v1597_v41 }
 0x725   :  { %v1668_v50 = vsel %vm198_vm0, %v1665_v49, 0.0  ;;  %v1678_v51 = vmul.f32 %v1665_v49, %v1665_v49 }
 0x726   :  { %v1669_v53 = vadd.f32 %v1668_v50, %v1664_v46 }
 0x727   :  { %v1679_v54 = vsel %vm198_vm0, %v1678_v51, 0.0 }
 0x728   :  { %v1670_v55 = vrot.slane %v1669_v53, 4  ;;  %v1680_v56 = vadd.f32 %v1679_v54, %v1677_v52 }
 0x72a   :  { %v1671_v57 = vadd.f32 %v1670_v55, %v1669_v53  ;;  %v1681_v45 = vrot.slane %v1680_v56, 4 }
 0x72c   :  { %v1672_v44 = vrot.slane %v1671_v57, 2  ;;  %v1682_v59 = vadd.f32 %v1681_v45, %v1680_v56 }
 0x72e   :  { %v1673_v62 = vadd.f32 %v1672_v44, %v1671_v57  ;;  %v1683_v42 = vrot.slane %v1682_v59, 2 }
 0x730   :  { %v1674_v60 = vrot.slane %v1673_v62, 1  ;;  %v1684_v58 = vadd.f32 %v1683_v42, %v1682_v59 }
 0x732   :  { %v1675_v63 = vadd.f32 %v1674_v60, %v1673_v62  ;;  %v1685_v61 = vrot.slane %v1684_v58, 1 }
 0x734   :  { %v1676_v1 = vmul.f32 0.083333336, %v1675_v63  ;;  %v1686_v3 = vadd.f32 %v1685_v61, %v1684_v58 }
 0x736   :  { %v1687_v0 = vmul.f32 0.083333336, %v1686_v3  ;;  %v1688_v2 = vmul.f32 %v1676_v1, %v1676_v1 }
 0x738   :  { %v1689_v4 = vsub.f32 %v1687_v0, %v1688_v2 }
 0x73a   :  { %v1690_v5 = vmax.f32 %v1689_v4, 0.0 }
 0x73c   :  { %v1691_v6 = vadd.f32 1e-05, %v1690_v5 }
 0x73e   :  { %1885 = vrsqrt.f32 %v1691_v6  ;;  %vm1698_vm15 = vweird.f32 %v1691_v6 }
 0x744   :  { %v1886_v7 = vpop.eup %1885 }
 0x745   :  { %v1693_v8 = vmul.f32 %v1886_v7, %v1691_v6  ;;  %vm1699_vm14 = vweird.f32 %v1886_v7 }
 0x746   :  { %vm1700_vm0 = vmor %vm1698_vm15, %vm1699_vm14 }
 0x747   :  { %v1694_v9 = vmul.f32 %v1886_v7, %v1693_v8 }
 0x749   :  { %v1695_v10 = vmul.f32 0.5, %v1694_v9 }
 0x74b   :  { %v1696_v11 = vsub.f32 1.5, %v1695_v10 }
 0x74d   :  { %v1697_v14 = vmul.f32 %v1886_v7, %v1696_v11 }
 0x74f   :  { %v1701_v15 = vsel %vm1700_vm0, %v1886_v7, %v1697_v14 }
 0x750   :  { %v1702_v16 = vmul.f32 %v1701_v15, %v1666_v13 }
 0x752   :  { %v1703_v18 = vmul.f32 %v1702_v16, %v1676_v1  ;;  %v1706_v22 = vperm.slane %v1702_v16, 0 }
 0x754   :  { %v1704_v25 = vsub.f32 %v1667_v17, %v1703_v18  ;;  %v1708_v30 = vmul.f32 %v1706_v22, %v1664_v46  ;;  %v1709_v43 = vmul.f32 %v1706_v22, %v1665_v49 }
 0x756   :  { %v1711_v12 = vperm.slane %v1704_v25, 0 }
 0x758   :  { %v1713_v48 = vadd.f32 %v1711_v12, %v1708_v30  ;;  %v1714_v27 = vadd.f32 %v1711_v12, %v1709_v43 }
 0x75a   :  { %v1715_v19 = vmax.f32 %v1713_v48, 0.0  ;;  %v1716_v20 = vmax.f32 %v1714_v27, 0.0 }
 0x75c   :  { %1717 = vst [vmem:[#allocation16 + $0xa] sm:$0x3f] %v1715_v19 }
 0x75d   :  { %1718 = vst [vmem:[#allocation16 + $0x14] sm:$0xc0] %v1715_v19 }
 0x75e   :  { %1719 = vst [vmem:[#allocation16 + $0x1c] sm:$0xf] %v1716_v20 }
 0x75f   :  { %1732 = dma.vmem_to_hbm [thread:$0]  %s1725_s9, 512, %s1727_s15, [#allocation4], %s2119_s23, %s2119_s23, %s2120_s24  }
 0x760   :  { %2113 = dma.done.wait [#allocation4], 512  }
 0x761   :  { %2114 = vsyncadd [#allocation4], 4294966784 }
 0x762   :  { %1737 = vsyncpa [#allocation3], 1 }
 0x763   :  { %1738 = vsyncpa [#allocation6], 1 }
 0x764   :  { %1739 = vsyncpa [#allocation9], 1 }
 0x765   :  { %1740 = vsyncpa [#allocation12], 1 }
 0x766   :  { %1741 = vsyncpa [#allocation15], 1 }
 0x767   :  { %1742 = vsyncpa [#allocation4], 1 }

</bundles_post_ra>
